<compile_context>
chip_gen: v7x
topology: tpu7x:2x2x1
jax: 0.10.0
libtpu: 0.0.40
codegen_flags: <defaults>
</compile_context>

<pallas_src>
import functools

import jax
import jax.numpy as jnp
from jax import lax
from jax.experimental import pallas as pl
from jax.experimental.pallas import tpu as pltpu

_NEG = -1e30  # finite "minus infinity": masks padded lanes, 0 * _NEG stays finite


def _round_up(x, m):
    return ((x + m - 1) // m) * m


def _pick_tile(n, target, align):
    """Largest multiple of `align` that is <= target and divides n; else the full dim."""
    t = min(target, (n // align) * align)
    while t >= align:
        if n % t == 0:
            return t
        t -= align
    return n


def _policy_kernel(x_ref, g_ref, w1_ref, b1_ref, w2_ref, b2_ref, w3_ref, b3_ref,
                   sample_ref, logp_ref, *, action_size):
    """One batch tile: MLP -> logits -> log-softmax + Gumbel-max sample."""
    # --- MLP: bf16 operands on the MXU, f32 accumulation ---
    x = x_ref[...].astype(jnp.bfloat16)
    h1 = jnp.maximum(
        jnp.dot(x, w1_ref[...], preferred_element_type=jnp.float32) + b1_ref[...], 0.0)
    h2 = jnp.maximum(
        jnp.dot(h1.astype(jnp.bfloat16), w2_ref[...],
                preferred_element_type=jnp.float32) + b2_ref[...], 0.0)
    # padded action lanes get bias=_NEG -> effectively masked logits
    logits = jnp.dot(h2.astype(jnp.bfloat16), w3_ref[...],
                     preferred_element_type=jnp.float32) + b3_ref[...]

    tb, a_pad = logits.shape
    iota = lax.broadcasted_iota(jnp.int32, (tb, a_pad), 1)

    # --- log-softmax (f32, numerically stable; padded lanes ~ -1e30, exp -> 0) ---
    m = jnp.max(logits, axis=-1, keepdims=True)
    lse = m + jnp.log(jnp.sum(jnp.exp(logits - m), axis=-1, keepdims=True))
    logp = logits - lse

    # --- Categorical sample via Gumbel-max (noise precomputed, streamed per tile) ---
    z = logits + g_ref[...]                               # padded lanes stay ~ -1e30
    zmax = jnp.max(z, axis=-1, keepdims=True)
    idx = jnp.min(jnp.where(z >= zmax, iota, a_pad), axis=-1, keepdims=True)
    sample_ref[...] = idx                                 # (TB, 1) int32
    # zero padded lanes so the downstream one-hot contraction is exact
    logp_ref[...] = jnp.where(iota < action_size, logp, 0.0)


def _quirk_logprob_kernel(sample_ref, logp_ref, out_ref):
    """log_probs[i, j] = logp[j, sample[i]]  (PyTorch Categorical broadcasting quirk)."""
    tbi = sample_ref.shape[0]
    a_pad = logp_ref.shape[1]
    iota = lax.broadcasted_iota(jnp.int32, (tbi, a_pad), 1)
    onehot = (sample_ref[...] == iota).astype(jnp.float32)          # (TBi, A_pad)
    # contract over the action dim without materializing logp.T (f32, exact selection)
    out_ref[...] = lax.dot_general(
        onehot, logp_ref[...],
        dimension_numbers=(((1,), (1,)), ((), ())),
        preferred_element_type=jnp.float32)                          # (TBi, TBj)


def fc_actor_discrete_forward(state, prepped, seed, *, action_size):
    """Full forward pass: policy kernel (batch-tiled) + (B,B) quirk-output kernel."""
    B, S = state.shape
    w1, b1 = prepped["w1"], prepped["b1"]
    w2, b2 = prepped["w2"], prepped["b2"]
    w3, b3 = prepped["w3"], prepped["b3"]
    H1, H2, A_pad = w1.shape[1], w2.shape[1], w3.shape[1]

    # Gumbel noise generated in the wrapper (tiny (B, A_pad) f32) -- avoids the
    # TPU-only prng_seed primitive that has no CPU/interpret lowering.
    key = jax.random.PRNGKey(jnp.asarray(seed, jnp.int32))
    gumbel = jax.random.gumbel(key, (B, A_pad), jnp.float32)

    # ---- Kernel 1: MLP + sample + per-row log-softmax, tiled over batch ----
    TB = _pick_tile(B, 128, 8)
    kernel1 = functools.partial(_policy_kernel, action_size=action_size)
    sample, logp = pl.pallas_call(
        kernel1,
        out_shape=(
            jax.ShapeDtypeStruct((B, 1), jnp.int32),       # TODO(synk): torch returns int64
            jax.ShapeDtypeStruct((B, A_pad), jnp.float32),  # log-softmax rows (padded)
        ),
        grid=(B // TB,),
        in_specs=[
            pl.BlockSpec((TB, S), lambda i: (i, 0)),
            pl.BlockSpec((TB, A_pad), lambda i: (i, 0)),
            pl.BlockSpec((S, H1), lambda i: (0, 0)),        # weights: VMEM-resident
            pl.BlockSpec((1, H1), lambda i: (0, 0)),
            pl.BlockSpec((H1, H2), lambda i: (0, 0)),
            pl.BlockSpec((1, H2), lambda i: (0, 0)),
            pl.BlockSpec((H2, A_pad), lambda i: (0, 0)),
            pl.BlockSpec((1, A_pad), lambda i: (0, 0)),
        ],
        out_specs=[
            pl.BlockSpec((TB, 1), lambda i: (i, 0)),
            pl.BlockSpec((TB, A_pad), lambda i: (i, 0)),
        ],
        compiler_params=pltpu.CompilerParams(dimension_semantics=("parallel",)),
    )(state, gumbel, w1, b1, w2, b2, w3, b3)

    # ---- Kernel 2: assemble the (B, B) quirk output, tiled over both batch axes ----
    TBi = _pick_tile(B, 128, 8)
    TBj = _pick_tile(B, 256, 128)   # lane-dense output slab
    log_probs = pl.pallas_call(
        _quirk_logprob_kernel,
        out_shape=jax.ShapeDtypeStruct((B, B), jnp.float32),
        grid=(B // TBi, B // TBj),
        in_specs=[
            pl.BlockSpec((TBi, 1), lambda i, j: (i, 0)),
            pl.BlockSpec((TBj, A_pad), lambda i, j: (j, 0)),
        ],
        out_specs=pl.BlockSpec((TBi, TBj), lambda i, j: (i, j)),
        compiler_params=pltpu.CompilerParams(
            dimension_semantics=("parallel", "parallel")),
    )(sample, logp)

    return sample, log_probs


def init_params(key, state_size, action_size, hidden_sizes=(128, 64)):
    """Deterministic init mirroring nn.Linear default (uniform +-1/sqrt(fan_in))."""
    sizes = [state_size] + list(hidden_sizes) + [action_size]
    params = {}
    for i in range(len(sizes) - 1):
        fan_in, fan_out = sizes[i], sizes[i + 1]
        key, kw, kb = jax.random.split(key, 3)
        bound = 1.0 / (fan_in ** 0.5)
        # stored as (in, out): equivalent to PyTorch weight (out, in) transposed
        params[f"w{i+1}"] = jax.random.uniform(
            kw, (fan_in, fan_out), jnp.float32, -bound, bound)
        params[f"b{i+1}"] = jax.random.uniform(
            kb, (1, fan_out), jnp.float32, -bound, bound)
    return params


def prepare_params(params, action_size):
    """Cast weights to bf16 and pad the action dim to a lane-dense multiple of 128."""
    h2, a = params["w3"].shape
    a_pad = _round_up(a, 128)
    w3 = jnp.zeros((h2, a_pad), jnp.float32).at[:, :a].set(params["w3"])
    b3 = jnp.full((1, a_pad), _NEG, jnp.float32).at[:, :a].set(params["b3"])
    return {
        "w1": params["w1"].astype(jnp.bfloat16),
        "b1": params["b1"].astype(jnp.float32),
        "w2": params["w2"].astype(jnp.bfloat16),
        "b2": params["b2"].astype(jnp.float32),
        "w3": w3.astype(jnp.bfloat16),   # zero-padded columns
        "b3": b3,                        # padded lanes = -1e30 -> masked logits
    }


if __name__ == "__main__":
    B = 256                 # exercises the batch grid (2 blocks of 128)
    STATE_SIZE = 16
    ACTION_SIZE = 8
    HIDDEN = (128, 64)

    root = jax.random.PRNGKey(0)
    k_param, k_state = jax.random.split(root)

    params = init_params(k_param, STATE_SIZE, ACTION_SIZE, HIDDEN)
    prepped = prepare_params(params, ACTION_SIZE)
    state = jax.random.normal(k_state, (B, STATE_SIZE), jnp.float32)
    seed = jnp.int32(42)

    fwd = jax.jit(functools.partial(fc_actor_discrete_forward, action_size=ACTION_SIZE))
    sample, log_probs = fwd(state, prepped, seed)
    jax.block_until_ready((sample, log_probs))

    # shape / range sanity (PyTorch module returns (B,1) int and (B,B) log_probs)
    assert sample.shape == (B, 1) and sample.dtype == jnp.int32
    assert log_probs.shape == (B, B) and log_probs.dtype == jnp.float32
    assert bool(jnp.all((sample >= 0) & (sample < ACTION_SIZE)))
    assert bool(jnp.all(log_probs <= 0.0))

    # pure-JAX f32 reference (loose tol: kernel uses bf16 weights on the MXU)
    h = jax.nn.relu(state @ params["w1"] + params["b1"])
    h = jax.nn.relu(h @ params["w2"] + params["b2"])
    ref_logp = jax.nn.log_softmax(h @ params["w3"] + params["b3"], axis=-1)
    ref_log_probs = ref_logp[:, sample[:, 0]].T   # [i, j] = logp[j, sample[i]]
    assert bool(jnp.max(jnp.abs(log_probs - ref_log_probs)) < 0.08)

    print("KERNEL_OK")
</pallas_src>

<mosaic_0001>
module attributes {stable_mosaic.version = 11 : i64} {
  func.func @_quirk_logprob_kernel(%arg0: i32, %arg1: i32, %arg2: memref<128x1xi32, #tpu.memory_space<vmem>>, %arg3: memref<256x128xf32, #tpu.memory_space<vmem>>, %arg4: memref<128x256xf32, #tpu.memory_space<vmem>>) attributes {dimension_semantics = [#tpu.dimension_semantics<parallel>, #tpu.dimension_semantics<parallel>], iteration_bounds = array<i64: 2, 1>, scalar_prefetch = 0 : i64, scratch_operands = 0 : i64, tpu.core_type = #tpu.core_type<tc>, window_params = [{transform_indices = @transform_0, window_bounds = array<i64: 128, 1>}, {transform_indices = @transform_1, window_bounds = array<i64: 256, 128>}, {transform_indices = @transform_2, window_bounds = array<i64: 128, 256>}]} {
    %0 = tpu.iota {dimensions = array<i32: 1>} : vector<128x128xi32>
    %c0 = arith.constant 0 : index
    %c0_0 = arith.constant 0 : index
    %1 = vector.load %arg2[%c0, %c0_0] : memref<128x1xi32, #tpu.memory_space<vmem>>, vector<128x1xi32>
    %2 = vector.broadcast %1 : vector<128x1xi32> to vector<128x128xi32>
    %3 = arith.cmpi eq, %2, %0 : vector<128x128xi32>
    %4 = arith.extui %3 : vector<128x128xi1> to vector<128x128xi32>
    %5 = arith.sitofp %4 : vector<128x128xi32> to vector<128x128xf32>
    %c0_1 = arith.constant 0 : index
    %c0_2 = arith.constant 0 : index
    %6 = vector.load %arg3[%c0_1, %c0_2] : memref<256x128xf32, #tpu.memory_space<vmem>>, vector<256x128xf32>
    %cst = arith.constant dense<0.000000e+00> : vector<128x256xf32>
    %7 = tpu.matmul %5, %6, %cst {dimension_numbers = #tpu.dot_dimension_numbers<[1], [1], [0], [0], [0, 0, 1, 0], [], []>} : vector<128x128xf32>, vector<256x128xf32>, vector<128x256xf32> -> vector<128x256xf32>
    %c0_3 = arith.constant 0 : index
    %c0_4 = arith.constant 0 : index
    %8 = vector.load %arg4[%c0_3, %c0_4] : memref<128x256xf32, #tpu.memory_space<vmem>>, vector<128x256xf32>
    tpu.vector_store %arg4[%c0_3, %c0_4], %7 {strides = array<i32>} : memref<128x256xf32, #tpu.memory_space<vmem>>, vector<128x256xf32>,
    return
  }
  func.func @transform_0(%arg0: i32, %arg1: i32) -> (i32, i32) {
    %c0_i32 = arith.constant 0 : i32
    %c0_i32_0 = arith.constant 0 : i32
    return %arg0, %c0_i32 : i32, i32
  }
  func.func @transform_1(%arg0: i32, %arg1: i32) -> (i32, i32) {
    %c0_i32 = arith.constant 0 : i32
    %c0_i32_0 = arith.constant 0 : i32
    return %arg1, %c0_i32 : i32, i32
  }
  func.func @transform_2(%arg0: i32, %arg1: i32) -> (i32, i32) {
    %c0_i32 = arith.constant 0 : i32
    return %arg0, %arg1 : i32, i32
  }
}

module attributes {stable_mosaic.version = 11 : i64} {
  func.func @_policy_kernel(%arg0: i32, %arg1: memref<128x16xf32, #tpu.memory_space<vmem>>, %arg2: memref<128x128xf32, #tpu.memory_space<vmem>>, %arg3: memref<16x128xbf16, #tpu.memory_space<vmem>>, %arg4: memref<1x128xf32, #tpu.memory_space<vmem>>, %arg5: memref<128x64xbf16, #tpu.memory_space<vmem>>, %arg6: memref<1x64xf32, #tpu.memory_space<vmem>>, %arg7: memref<64x128xbf16, #tpu.memory_space<vmem>>, %arg8: memref<1x128xf32, #tpu.memory_space<vmem>>, %arg9: memref<128x1xi32, #tpu.memory_space<vmem>>, %arg10: memref<128x128xf32, #tpu.memory_space<vmem>>) attributes {dimension_semantics = [#tpu.dimension_semantics<parallel>], iteration_bounds = array<i64: 2>, scalar_prefetch = 0 : i64, scratch_operands = 0 : i64, tpu.core_type = #tpu.core_type<tc>, window_params = [{transform_indices = @transform_0, window_bounds = array<i64: 128, 16>}, {transform_indices = @transform_1, window_bounds = array<i64: 128, 128>}, {pipeline_mode = #tpu.pipeline_mode<synchronous>, transform_indices = @transform_2, window_bounds = array<i64: 16, 128>}, {pipeline_mode = #tpu.pipeline_mode<synchronous>, transform_indices = @transform_3, window_bounds = array<i64: 1, 128>}, {pipeline_mode = #tpu.pipeline_mode<synchronous>, transform_indices = @transform_4, window_bounds = array<i64: 128, 64>}, {pipeline_mode = #tpu.pipeline_mode<synchronous>, transform_indices = @transform_5, window_bounds = array<i64: 1, 64>}, {pipeline_mode = #tpu.pipeline_mode<synchronous>, transform_indices = @transform_6, window_bounds = array<i64: 64, 128>}, {pipeline_mode = #tpu.pipeline_mode<synchronous>, transform_indices = @transform_7, window_bounds = array<i64: 1, 128>}, {transform_indices = @transform_8, window_bounds = array<i64: 128, 1>}, {transform_indices = @transform_9, window_bounds = array<i64: 128, 128>}]} {
    %c0 = arith.constant 0 : index
    %c0_0 = arith.constant 0 : index
    %0 = vector.load %arg1[%c0, %c0_0] : memref<128x16xf32, #tpu.memory_space<vmem>>, vector<128x16xf32>
    %1 = arith.truncf %0 : vector<128x16xf32> to vector<128x16xbf16>
    %c0_1 = arith.constant 0 : index
    %c0_2 = arith.constant 0 : index
    %2 = vector.load %arg3[%c0_1, %c0_2] : memref<16x128xbf16, #tpu.memory_space<vmem>>, vector<16x128xbf16>
    %cst = arith.constant dense<0.000000e+00> : vector<128x128xf32>
    %3 = tpu.matmul %1, %2, %cst {dimension_numbers = #tpu.dot_dimension_numbers<[1], [0], [0], [1], [0, 0, 1, 1], [], []>} : vector<128x16xbf16>, vector<16x128xbf16>, vector<128x128xf32> -> vector<128x128xf32>
    %c0_3 = arith.constant 0 : index
    %c0_4 = arith.constant 0 : index
    %4 = vector.load %arg4[%c0_3, %c0_4] : memref<1x128xf32, #tpu.memory_space<vmem>>, vector<1x128xf32>
    %5 = vector.broadcast %4 : vector<1x128xf32> to vector<128x128xf32>
    %6 = arith.addf %3, %5 : vector<128x128xf32>
    %cst_5 = arith.constant 0.000000e+00 : f32
    %7 = vector.broadcast %cst_5 : f32 to vector<128x128xf32>
    %8 = arith.maximumf %6, %7 : vector<128x128xf32>
    %9 = arith.truncf %8 : vector<128x128xf32> to vector<128x128xbf16>
    %c0_6 = arith.constant 0 : index
    %c0_7 = arith.constant 0 : index
    %10 = vector.load %arg5[%c0_6, %c0_7] : memref<128x64xbf16, #tpu.memory_space<vmem>>, vector<128x64xbf16>
    %cst_8 = arith.constant dense<0.000000e+00> : vector<128x64xf32>
    %11 = tpu.matmul %9, %10, %cst_8 {dimension_numbers = #tpu.dot_dimension_numbers<[1], [0], [0], [1], [0, 0, 1, 1], [], []>} : vector<128x128xbf16>, vector<128x64xbf16>, vector<128x64xf32> -> vector<128x64xf32>
    %c0_9 = arith.constant 0 : index
    %c0_10 = arith.constant 0 : index
    %12 = vector.load %arg6[%c0_9, %c0_10] : memref<1x64xf32, #tpu.memory_space<vmem>>, vector<1x64xf32>
    %13 = vector.broadcast %12 : vector<1x64xf32> to vector<128x64xf32>
    %14 = arith.addf %11, %13 : vector<128x64xf32>
    %cst_11 = arith.constant 0.000000e+00 : f32
    %15 = vector.broadcast %cst_11 : f32 to vector<128x64xf32>
    %16 = arith.maximumf %14, %15 : vector<128x64xf32>
    %17 = arith.truncf %16 : vector<128x64xf32> to vector<128x64xbf16>
    %c0_12 = arith.constant 0 : index
    %c0_13 = arith.constant 0 : index
    %18 = vector.load %arg7[%c0_12, %c0_13] : memref<64x128xbf16, #tpu.memory_space<vmem>>, vector<64x128xbf16>
    %cst_14 = arith.constant dense<0.000000e+00> : vector<128x128xf32>
    %19 = tpu.matmul %17, %18, %cst_14 {dimension_numbers = #tpu.dot_dimension_numbers<[1], [0], [0], [1], [0, 0, 1, 1], [], []>} : vector<128x64xbf16>, vector<64x128xbf16>, vector<128x128xf32> -> vector<128x128xf32>
    %c0_15 = arith.constant 0 : index
    %c0_16 = arith.constant 0 : index
    %20 = vector.load %arg8[%c0_15, %c0_16] : memref<1x128xf32, #tpu.memory_space<vmem>>, vector<1x128xf32>
    %21 = vector.broadcast %20 : vector<1x128xf32> to vector<128x128xf32>
    %22 = arith.addf %19, %21 : vector<128x128xf32>
    %23 = tpu.iota {dimensions = array<i32: 1>} : vector<128x128xi32>
    %cst_17 = arith.constant dense<0xFF800000> : vector<128xf32>
    %24 = vector.multi_reduction <maximumf>, %22, %cst_17 [1] : vector<128x128xf32> to vector<128xf32>
    %25 = vector.shape_cast %24 : vector<128xf32> to vector<128x1xf32>
    %26 = vector.broadcast %25 : vector<128x1xf32> to vector<128x128xf32>
    %27 = arith.subf %22, %26 : vector<128x128xf32>
    %28 = math.exp %27 : vector<128x128xf32>
    %cst_18 = arith.constant dense<0.000000e+00> : vector<128xf32>
    %29 = vector.multi_reduction <add>, %28, %cst_18 [1] : vector<128x128xf32> to vector<128xf32>
    %30 = vector.shape_cast %29 : vector<128xf32> to vector<128x1xf32>
    %31 = math.log %30 : vector<128x1xf32>
    %32 = arith.addf %25, %31 : vector<128x1xf32>
    %33 = vector.broadcast %32 : vector<128x1xf32> to vector<128x128xf32>
    %34 = arith.subf %22, %33 : vector<128x128xf32>
    %c0_19 = arith.constant 0 : index
    %c0_20 = arith.constant 0 : index
    %35 = vector.load %arg2[%c0_19, %c0_20] : memref<128x128xf32, #tpu.memory_space<vmem>>, vector<128x128xf32>
    %36 = arith.addf %22, %35 : vector<128x128xf32>
    %cst_21 = arith.constant dense<0xFF800000> : vector<128xf32>
    %37 = vector.multi_reduction <maximumf>, %36, %cst_21 [1] : vector<128x128xf32> to vector<128xf32>
    %38 = vector.shape_cast %37 : vector<128xf32> to vector<128x1xf32>
    %39 = vector.broadcast %38 : vector<128x1xf32> to vector<128x128xf32>
    %40 = arith.cmpf oge, %36, %39 : vector<128x128xf32>
    %c128_i32 = arith.constant 128 : i32
    %41 = vector.broadcast %c128_i32 : i32 to vector<128x128xi32>
    %42 = arith.select %40, %23, %41 : vector<128x128xi1>, vector<128x128xi32>
    %cst_22 = arith.constant dense<2147483647> : vector<128xi32>
    %43 = vector.multi_reduction <minsi>, %42, %cst_22 [1] : vector<128x128xi32> to vector<128xi32>
    %44 = vector.shape_cast %43 : vector<128xi32> to vector<128x1xi32>
    %c0_23 = arith.constant 0 : index
    %c0_24 = arith.constant 0 : index
    %45 = vector.load %arg9[%c0_23, %c0_24] : memref<128x1xi32, #tpu.memory_space<vmem>>, vector<128x1xi32>
    tpu.vector_store %arg9[%c0_23, %c0_24], %44 {strides = array<i32>} : memref<128x1xi32, #tpu.memory_space<vmem>>, vector<128x1xi32>,
    %c8_i32 = arith.constant 8 : i32
    %46 = vector.broadcast %c8_i32 : i32 to vector<128x128xi32>
    %47 = arith.cmpi slt, %23, %46 : vector<128x128xi32>
    %cst_25 = arith.constant 0.000000e+00 : f32
    %48 = vector.broadcast %cst_25 : f32 to vector<128x128xf32>
    %49 = arith.select %47, %34, %48 : vector<128x128xi1>, vector<128x128xf32>
    %c0_26 = arith.constant 0 : index
    %c0_27 = arith.constant 0 : index
    %50 = vector.load %arg10[%c0_26, %c0_27] : memref<128x128xf32, #tpu.memory_space<vmem>>, vector<128x128xf32>
    tpu.vector_store %arg10[%c0_26, %c0_27], %49 {strides = array<i32>} : memref<128x128xf32, #tpu.memory_space<vmem>>, vector<128x128xf32>,
    return
  }
  func.func @transform_0(%arg0: i32) -> (i32, i32) {
    %c0_i32 = arith.constant 0 : i32
    %c0_i32_0 = arith.constant 0 : i32
    return %arg0, %c0_i32 : i32, i32
  }
  func.func @transform_1(%arg0: i32) -> (i32, i32) {
    %c0_i32 = arith.constant 0 : i32
    %c0_i32_0 = arith.constant 0 : i32
    return %arg0, %c0_i32 : i32, i32
  }
  func.func @transform_2(%arg0: i32) -> (i32, i32) {
    %c0_i32 = arith.constant 0 : i32
    %c0_i32_0 = arith.constant 0 : i32
    %c0_i32_1 = arith.constant 0 : i32
    return %c0_i32, %c0_i32_0 : i32, i32
  }
  func.func @transform_3(%arg0: i32) -> (i32, i32) {
    %c0_i32 = arith.constant 0 : i32
    %c0_i32_0 = arith.constant 0 : i32
    %c0_i32_1 = arith.constant 0 : i32
    return %c0_i32, %c0_i32_0 : i32, i32
  }
  func.func @transform_4(%arg0: i32) -> (i32, i32) {
    %c0_i32 = arith.constant 0 : i32
    %c0_i32_0 = arith.constant 0 : i32
    %c0_i32_1 = arith.constant 0 : i32
    return %c0_i32, %c0_i32_0 : i32, i32
  }
  func.func @transform_5(%arg0: i32) -> (i32, i32) {
    %c0_i32 = arith.constant 0 : i32
    %c0_i32_0 = arith.constant 0 : i32
    %c0_i32_1 = arith.constant 0 : i32
    return %c0_i32, %c0_i32_0 : i32, i32
  }
  func.func @transform_6(%arg0: i32) -> (i32, i32) {
    %c0_i32 = arith.constant 0 : i32
    %c0_i32_0 = arith.constant 0 : i32
    %c0_i32_1 = arith.constant 0 : i32
    return %c0_i32, %c0_i32_0 : i32, i32
  }
  func.func @transform_7(%arg0: i32) -> (i32, i32) {
    %c0_i32 = arith.constant 0 : i32
    %c0_i32_0 = arith.constant 0 : i32
    %c0_i32_1 = arith.constant 0 : i32
    return %c0_i32, %c0_i32_0 : i32, i32
  }
  func.func @transform_8(%arg0: i32) -> (i32, i32) {
    %c0_i32 = arith.constant 0 : i32
    %c0_i32_0 = arith.constant 0 : i32
    return %arg0, %c0_i32 : i32, i32
  }
  func.func @transform_9(%arg0: i32) -> (i32, i32) {
    %c0_i32 = arith.constant 0 : i32
    %c0_i32_0 = arith.constant 0 : i32
    return %arg0, %c0_i32 : i32, i32
  }
}

</mosaic_0001>

<bundles_post_ra>
// kernel: fc_actor_discrete_forward.3
= control target key start
LH: loop header
LB: loop body
LE: loop exit
PB: predicated region body
PF: predicated region fallthrough
CT: control target
= control target key end

     0   :  { %7 = vsyncpa [#allocation3], 0  ;;  %s1233_s0 = inlined_call_operand.vmem [shape: s32[256,1], index: 0, kind: input, shape index: {}]   ;;  %s1234_s1 = inlined_call_operand.vmem [shape: f32[256,128], index: 1, kind: input, shape index: {}]   ;;  %s1235_s2 = inlined_call_operand.hbm [shape: f32[256,256], index: 2, kind: output, shape index: {}]  }
   0x1   :  { %9 = vsyncpa [#allocation3 + $0x1], 0  ;;  %s948_s9 = smov 0   ;;  %s950_s10 = smov 0  }
   0x2   :  { %s952_s11 = smov 0   ;;  %s954_s12 = smov 0  }
   0x3   :  { %s956_s13 = smov 0   ;;  %s958_s14 = smov 0  }
   0x4 LB: > { %s626_s15 = sadd.s32 4294967295, %s926_s14   ;;  %s627_s16 = sadd.s32 4294967294, %s926_s14   ;;  %s926_s14 = sphi %s958_s14, %s15_s14   ;;  %s922_s13 = sphi %s956_s13, %s1242_s13   ;;  %s918_s12 = sphi %s954_s12, %s1241_s12   ;;  %s914_s11 = sphi %s952_s11, %s1240_s11   ;;  %s910_s10 = sphi %s950_s10, %s1239_s10   ;;  %s906_s9 = sphi %s948_s9, %s1238_s9  }
   0x5   : > { %s27_s17 = sadd.s32 1, %s922_s13  ;;  %s88_s18 = sadd.s32 1, %s914_s11 }
   0x6   : > { %p29_p0 = scmp.ge.s32.totalorder %s27_s17, 2  ;;  %p98_p1 = scmp.ne.s32.totalorder %s914_s11, %s910_s10 }
   0x7   : > { %p99_p2 = scmp.eq.s32.totalorder %s626_s15, 1  ;;  %p104_p3 = scmp.ne.s32.totalorder %s910_s10, %s906_s9 }
   0x8   : > { %s1244_s17 = smov (%p29_p0, %s27_s17), 0  ;;  %p105_p5 = scmp.eq.s32.totalorder %s627_s16, 1 }
   0x9   : > { %p988_p4 = por %p99_p2, %p98_p1  ;;  %s83_s20 = ssub.s32 %s922_s13, %s1244_s17 }
   0xa   : > { %p631_p6 = scmp.ge.s32.totalorder %s926_s14, 1  ;;  %p86_p7 = scmp.eq.s32.totalorder %s83_s20, 0 }
   0xb   : > { %p995_p8 = por %p105_p5, %p104_p3  ;;  %p141_p9 = scmp.lt.s32.totalorder %s926_s14, 3 }
   0xc   : > { %s1001_s22 = scalar_select %p86_p7, %s914_s11, %s88_s18  }
   0xd   : > { %p142_p10 = pnand %p631_p6, %p141_p9 }
   0xe   : > { %s633_s23 = sshll.u32 (!%p142_p10), %s918_s12, 4  ;;  %v312_v0 = vld [vmem:[%s1234_s1 + $0x80] sm:$0xff] (!%p142_p10)  ;;  %v313_v1 = vld [vmem:[%s1234_s1 + $0x88] sm:$0xff] (!%p142_p10)  ;;  %v928_v3 = vmov (!%p142_p10), 0   ;;  %v314_v6 = vld [vmem:[%s1234_s1 + $0x90] sm:$0xff] (!%p142_p10)  ;;  %s165_s20 = sand.u32 (!%p142_p10), 1, %s910_s10  }
   0xf   : > { %145 = sbr.rel (%p142_p10) target bundleno = 416 (0x1a0), region = 28  ;;  %v296_v2 = vld [vmem:[%s1234_s1] sm:$0xff] (!%p142_p10)  ;;  %847 = vset.pattern.permute.xlu1 (!%p142_p10), %v928_v3  ;;  %846 = vset.pattern.permute.xlu0 (!%p142_p10), %v928_v3  ;;  %p169_p11 = scmp.lt.s32.totalorder (!%p142_p10), %s633_s23, 31  ;;  %v739_v4 = vpack.c.bf16 (!%p142_p10), %v313_v1, %v312_v0  ;;  %v297_v5 = vld [vmem:[%s1234_s1 + $0x8] sm:$0xff] (!%p142_p10)  ;;  %v315_v7 = vld [vmem:[%s1234_s1 + $0x98] sm:$0xff] (!%p142_p10)  ;;  %v182_v1 = vlaneseq (!%p142_p10) }
  0x10   : > { %v741_v8 = vpack.c.bf16 (!%p142_p10), %v297_v5, %v296_v2  ;;  %v743_v9 = vpack.c.bf16 (!%p142_p10), %v315_v7, %v314_v6  ;;  %v298_v10 = vld [vmem:[%s1234_s1 + $0x10] sm:$0xff] (!%p142_p10)  ;;  %v299_v11 = vld [vmem:[%s1234_s1 + $0x18] sm:$0xff] (!%p142_p10)  ;;  %v316_v12 = vld [vmem:[%s1234_s1 + $0xa0] sm:$0xff] (!%p142_p10)  ;;  %v929_v5 = vmov (!%p142_p10), 1.0   ;;  %s632_s24 = sshll.u32 (!%p142_p10), %s165_s20, 8  ;;  %s674_s26 = sshll.u32 (!%p142_p10), %s918_s12, 12 }
  0x11   : > { %740 = vmatprep.subr.bf16.mxu0 (!%p142_p10), %v739_v4  ;;  %771 = vmatprep.subr.bf16.mxu1 (!%p142_p10), %v739_v4  ;;  %v317_v15 = vld [vmem:[%s1234_s1 + $0xa8] sm:$0xff] (!%p142_p10)  ;;  %v745_v18 = vpack.c.bf16 (!%p142_p10), %v299_v11, %v298_v10  ;;  %v300_v22 = vld [vmem:[%s1234_s1 + $0x20] sm:$0xff] (!%p142_p10)  ;;  %v318_v24 = vld [vmem:[%s1234_s1 + $0xb0] sm:$0xff] (!%p142_p10)  ;;  %v1121_v2 = vand.u32 (!%p142_p10), 127, %v182_v1  ;;  %s1142_s25 = scalar_lea.vmem (!%p142_p10), [#allocation2], %s632_s24  ;;  %s1179_s28 = scalar_lea.hbm (!%p142_p10), %s1235_s2, %s674_s26 }
  0x12   : > { %742 = vmatpush3.bf16.xpose.msra.mxu0 (!%p142_p10), %v741_v8  ;;  %779 = vmatpush3.bf16.xpose.msra.mxu1 (!%p142_p10), %v741_v8  ;;  %v747_v19 = vpack.c.bf16 (!%p142_p10), %v317_v15, %v316_v12  ;;  %v301_v23 = vld [vmem:[%s1234_s1 + $0x28] sm:$0xff] (!%p142_p10)  ;;  %v319_v25 = vld [vmem:[%s1234_s1 + $0xb8] sm:$0xff] (!%p142_p10)  ;;  %v302_v32 = vld [vmem:[%s1234_s1 + $0x30] sm:$0xff] (!%p142_p10)  ;;  %s1187_s12 = scalar_lea.sflag (!%p142_p10), [#allocation3], %s165_s20  ;;  %s930_s30 = smov (!%p142_p10), [#allocation2]  }
  0x13   : > { %744 = vmatprep.subr.bf16.mxu0 (!%p142_p10), %v743_v9  ;;  %772 = vmatprep.subr.bf16.mxu1 (!%p142_p10), %v743_v9  ;;  %v749_v28 = vpack.c.bf16 (!%p142_p10), %v301_v23, %v300_v22  ;;  %v751_v29 = vpack.c.bf16 (!%p142_p10), %v319_v25, %v318_v24  ;;  %v303_v33 = vld [vmem:[%s1234_s1 + $0x38] sm:$0xff] (!%p142_p10)  ;;  %v320_v34 = vld [vmem:[%s1234_s1 + $0xc0] sm:$0xff] (!%p142_p10)  ;;  %v321_v35 = vld [vmem:[%s1234_s1 + $0xc8] sm:$0xff] (!%p142_p10)  ;;  %s852_s3 = sshll.u32 (!%p142_p10), %s930_s30, 4  ;;  %s853_s3 = int_to_ptr.vmem [resolvable:$false] %s852_s3 }
  0x14   : > { %v753_v38 = vpack.c.bf16 (!%p142_p10), %v303_v33, %v302_v32  ;;  %v755_v39 = vpack.c.bf16 (!%p142_p10), %v321_v35, %v320_v34  ;;  %v304_v42 = vld [vmem:[%s1234_s1 + $0x40] sm:$0xff] (!%p142_p10)  ;;  %v305_v43 = vld [vmem:[%s1234_s1 + $0x48] sm:$0xff] (!%p142_p10)  ;;  %v322_v44 = vld [vmem:[%s1234_s1 + $0xd0] sm:$0xff] (!%p142_p10)  ;;  %s854_s4 = scalar_lea.vmem (!%p142_p10), %s853_s3, 8192 }
  0x15   : > { %v323_v45 = vld [vmem:[%s1234_s1 + $0xd8] sm:$0xff] (!%p142_p10)  ;;  %v757_v48 = vpack.c.bf16 (!%p142_p10), %v305_v43, %v304_v42  ;;  %v306_v50 = vld [vmem:[%s1234_s1 + $0x50] sm:$0xff] (!%p142_p10)  ;;  %v324_v52 = vld [vmem:[%s1234_s1 + $0xe0] sm:$0xff] (!%p142_p10) }
  0x16   : > { %s1246_s23 = smov (!%p169_p11, %s633_s23), 31  ;;  %v759_v49 = vpack.c.bf16 %v323_v45, %v322_v44  ;;  %v307_v51 = vld [vmem:[%s1234_s1 + $0x58] sm:$0xff]  ;;  %v325_v53 = vld [vmem:[%s1234_s1 + $0xe8] sm:$0xff]  ;;  %v308_v56 = vld [vmem:[%s1234_s1 + $0x60] sm:$0xff] }
  0x17   : > { %s634_s8 = sshll.u32 %s1246_s23, 3  ;;  %v761_v54 = vpack.c.bf16 %v307_v51, %v306_v50  ;;  %v763_v55 = vpack.c.bf16 %v325_v53, %v324_v52  ;;  %v309_v57 = vld [vmem:[%s1234_s1 + $0x68] sm:$0xff]  ;;  %v326_v58 = vld [vmem:[%s1234_s1 + $0xf0] sm:$0xff]  ;;  %v327_v59 = vld [vmem:[%s1234_s1 + $0xf8] sm:$0xff] }
  0x18   : > { %s1025_s18 = scalar_lea.vmem %s1233_s0, %s634_s8  ;;  %v765_v60 = vpack.c.bf16 %v309_v57, %v308_v56  ;;  %v767_v61 = vpack.c.bf16 %v327_v59, %v326_v58  ;;  %v310_v62 = vld [vmem:[%s1234_s1 + $0x70] sm:$0xff]  ;;  %v311_v63 = vld [vmem:[%s1234_s1 + $0x78] sm:$0xff] }
  0x19   : > { %v185_v13 = vld [vmem:[%s1025_s18 + $0x8] sm:$0xff]  ;;  %v184_v14 = vld [vmem:[%s1025_s18] sm:$0xff]  ;;  %v194_v20 = vld [vmem:[%s1025_s18 + $0x50] sm:$0xff]  ;;  %v769_v0 = vpack.c.bf16 %v311_v63, %v310_v62 }
  0x1a   : > { %204 = vperm.xlu1 %847, %v185_v13   ;;  %201 = vperm.xlu0 %846, %v184_v14   ;;  %v193_v16 = vld [vmem:[%s1025_s18 + $0x48] sm:$0xff]  ;;  %v192_v17 = vld [vmem:[%s1025_s18 + $0x40] sm:$0xff]  ;;  %v186_v21 = vld [vmem:[%s1025_s18 + $0x10] sm:$0xff] }
  0x1b   : > { %746 = vmatpush3.bf16.xpose.msra.mxu0 %v745_v18  ;;  %780 = vmatpush3.bf16.xpose.msra.mxu1 %v745_v18  ;;  %v195_v26 = vld [vmem:[%s1025_s18 + $0x58] sm:$0xff]  ;;  %v196_v30 = vld [vmem:[%s1025_s18 + $0x60] sm:$0xff]  ;;  %v197_v36 = vld [vmem:[%s1025_s18 + $0x68] sm:$0xff] }
  0x1c   : > { %748 = vmatprep.subr.bf16.mxu0 %v747_v19  ;;  %773 = vmatprep.subr.bf16.mxu1 %v747_v19  ;;  %v187_v27 = vld [vmem:[%s1025_s18 + $0x18] sm:$0xff]  ;;  %v188_v31 = vld [vmem:[%s1025_s18 + $0x20] sm:$0xff]  ;;  %v189_v37 = vld [vmem:[%s1025_s18 + $0x28] sm:$0xff] }
  0x1d   : > { %v198_v40 = vld [vmem:[%s1025_s18 + $0x70] sm:$0xff]  ;;  %v199_v46 = vld [vmem:[%s1025_s18 + $0x78] sm:$0xff] }
  0x1e   : > { %228 = vperm.xlu1 %847, %v193_v16   ;;  %225 = vperm.xlu0 %846, %v192_v17   ;;  %v190_v41 = vld [vmem:[%s1025_s18 + $0x30] sm:$0xff]  ;;  %v191_v47 = vld [vmem:[%s1025_s18 + $0x38] sm:$0xff]  ;;  %s538_s18 = sshll.u32 %s1142_s25, 4  ;;  %s1181_s18 = int_to_ptr.vmem [resolvable:$true] %s538_s18 }
  0x1f   : > { %s848_s29 = scalar_lea.vmem %s1181_s18, 4096  ;;  %p855_p1 = scmp.lt.s32.totalorder %s1181_s18, %s853_s3 }
  0x20   : > { %p849_p12 = scmp.ne.s32.totalorder %s1181_s18, %s848_s29  ;;  %p856_p2 = scmp.lt.s32.totalorder %s854_s4, %s848_s29 }
  0x22   : > { %231 = vperm.xlu1 %847, %v194_v20   ;;  %207 = vperm.xlu0 %846, %v186_v21   ;;  %p850_p13 = pnand %p849_p12, %p988_p4  ;;  %p857_p3 = por %p856_p2, %p855_p1 }
  0x23   : > { %750 = vmatpush3.bf16.xpose.msra.mxu0 %v749_v28  ;;  %781 = vmatpush3.bf16.xpose.msra.mxu1 %v749_v28 }
  0x24   : > { %752 = vmatprep.subr.bf16.mxu0 %v751_v29  ;;  %774 = vmatprep.subr.bf16.mxu1 %v751_v29  ;;  %p851_p0 = pneg %p850_p13 }
  0x26   : > { %234 = vperm.xlu1 %847, %v195_v26   ;;  %210 = vperm.xlu0 %846, %v187_v27   ;;  %p858_p5 = pnand %p857_p3, %p851_p0 }
  0x2a   : > { %237 = vperm.xlu1 %847, %v196_v30   ;;  %213 = vperm.xlu0 %846, %v188_v31  }
  0x2b   : > { %754 = vmatpush3.bf16.xpose.msra.mxu0 %v753_v38  ;;  %782 = vmatpush3.bf16.xpose.msra.mxu1 %v753_v38 }
  0x2c   : > { %756 = vmatprep.subr.bf16.mxu0 %v755_v39  ;;  %775 = vmatprep.subr.bf16.mxu1 %v755_v39 }
  0x2e   : > { %240 = vperm.xlu1 %847, %v197_v36   ;;  %216 = vperm.xlu0 %846, %v189_v37  }
  0x32   : > { %243 = vperm.xlu1 %847, %v198_v40   ;;  %219 = vperm.xlu0 %846, %v190_v41  }
  0x33   : > { %758 = vmatpush3.bf16.xpose.msra.mxu0 %v757_v48  ;;  %783 = vmatpush3.bf16.xpose.msra.mxu1 %v757_v48 }
  0x34   : > { %760 = vmatprep.subr.bf16.mxu0 %v759_v49  ;;  %776 = vmatprep.subr.bf16.mxu1 %v759_v49 }
  0x36   : > { %246 = vperm.xlu1 %847, %v199_v46   ;;  %222 = vperm.xlu0 %846, %v191_v47  }
  0x3b   : > { %762 = vmatpush3.bf16.xpose.msra.mxu0 %v761_v54  ;;  %784 = vmatpush3.bf16.xpose.msra.mxu1 %v761_v54 }
  0x3c   : > { %764 = vmatprep.subr.bf16.mxu0 %v763_v55  ;;  %777 = vmatprep.subr.bf16.mxu1 %v763_v55 }
  0x43   : > { %766 = vmatpush3.bf16.xpose.msra.mxu0 %v765_v60  ;;  %785 = vmatpush3.bf16.xpose.msra.mxu1 %v765_v60 }
  0x44   : > { %768 = vmatprep.subr.bf16.mxu0 %v767_v61  ;;  %778 = vmatprep.subr.bf16.mxu1 %v767_v61 }
  0x4b   : > { %770 = vmatpush3.bf16.xpose.msra.mxu0 %v769_v0  ;;  %786 = vmatpush3.bf16.xpose.msra.mxu1 %v769_v0 }
  0x99   : > { %v205_v3 = vpop.permute.xlu1 %204  ;;  %v202_v4 = vpop.permute.xlu0 %201 }
  0x9a   : > { %vm249_vm0 = vcmp.eq.s32.totalorder %v205_v3, %v1121_v2  ;;  %vm248_vm1 = vcmp.eq.s32.totalorder %v202_v4, %v1121_v2 }
  0x9b   : > { %707 = vmatprep.mubr.msk.f32.mxu0 %vm248_vm1, %v929_v5 }
  0x9c   : > { %708 = vmatmul.mubr.msk.f32.vlgmr.msra.gmra.mrb[0].mxu0 %vm248_vm1, %v929_v5 }
  0x9d   : > { %v229_v6 = vpop.permute.xlu1 %228  ;;  %v226_v7 = vpop.permute.xlu0 %225  ;;  %709 = vmatprep.mubr.msk.f32.mxu0 %vm249_vm0, %v929_v5 }
  0x9e   : > { %vm256_vm2 = vcmp.eq.s32.totalorder %v226_v7, %v1121_v2  ;;  %vm257_vm3 = vcmp.eq.s32.totalorder %v229_v6, %v1121_v2 }
  0x9f   : > { %723 = vmatprep.mubr.msk.f32.mxu1 %vm256_vm2, %v929_v5 }
  0xa0   : > { %710 = vmatmul.mubr.msk.f32.gmra.mrb[2].mxu0 %vm249_vm0, %v929_v5  ;;  %724 = vmatmul.mubr.msk.f32.vlgmr.msra.gmra.mrb[0].mxu1 %vm256_vm2, %v929_v5 }
  0xa1   : > { %v232_v8 = vpop.permute.xlu1 %231  ;;  %725 = vmatprep.mubr.msk.f32.mxu1 %vm257_vm3, %v929_v5  ;;  %v208_v9 = vpop.permute.xlu0 %207 }
  0xa2   : > { %vm250_vm4 = vcmp.eq.s32.totalorder %v208_v9, %v1121_v2  ;;  %vm258_vm5 = vcmp.eq.s32.totalorder %v232_v8, %v1121_v2 }
  0xa3   : > { %711 = vmatprep.mubr.msk.f32.mxu0 %vm250_vm4, %v929_v5 }
  0xa4   : > { %712 = vmatmul.mubr.msk.f32.gmra.mrb[4].mxu0 %vm250_vm4, %v929_v5  ;;  %726 = vmatmul.mubr.msk.f32.gmra.mrb[2].mxu1 %vm257_vm3, %v929_v5 }
  0xa5   : > { %v235_v10 = vpop.permute.xlu1 %234  ;;  %727 = vmatprep.mubr.msk.f32.mxu1 %vm258_vm5, %v929_v5  ;;  %v211_v11 = vpop.permute.xlu0 %210 }
  0xa6   : > { %vm251_vm6 = vcmp.eq.s32.totalorder %v211_v11, %v1121_v2  ;;  %vm259_vm7 = vcmp.eq.s32.totalorder %v235_v10, %v1121_v2 }
  0xa7   : > { %713 = vmatprep.mubr.msk.f32.mxu0 %vm251_vm6, %v929_v5 }
  0xa8   : > { %714 = vmatmul.mubr.msk.f32.gmra.mrb[6].mxu0 %vm251_vm6, %v929_v5  ;;  %728 = vmatmul.mubr.msk.f32.gmra.mrb[4].mxu1 %vm258_vm5, %v929_v5 }
  0xa9   : > { %v238_v12 = vpop.permute.xlu1 %237  ;;  %729 = vmatprep.mubr.msk.f32.mxu1 %vm259_vm7, %v929_v5  ;;  %v214_v13 = vpop.permute.xlu0 %213 }
  0xaa   : > { %vm252_vm8 = vcmp.eq.s32.totalorder %v214_v13, %v1121_v2  ;;  %vm260_vm9 = vcmp.eq.s32.totalorder %v238_v12, %v1121_v2 }
  0xab   : > { %715 = vmatprep.mubr.msk.f32.mxu0 %vm252_vm8, %v929_v5 }
  0xac   : > { %716 = vmatmul.mubr.msk.f32.gmra.mrb[8].mxu0 %vm252_vm8, %v929_v5  ;;  %730 = vmatmul.mubr.msk.f32.gmra.mrb[6].mxu1 %vm259_vm7, %v929_v5 }
  0xad   : > { %v241_v14 = vpop.permute.xlu1 %240  ;;  %731 = vmatprep.mubr.msk.f32.mxu1 %vm260_vm9, %v929_v5  ;;  %v217_v15 = vpop.permute.xlu0 %216 }
  0xae   : > { %vm253_vm10 = vcmp.eq.s32.totalorder %v217_v15, %v1121_v2  ;;  %vm261_vm11 = vcmp.eq.s32.totalorder %v241_v14, %v1121_v2 }
  0xaf   : > { %717 = vmatprep.mubr.msk.f32.mxu0 %vm253_vm10, %v929_v5 }
  0xb0   : > { %718 = vmatmul.mubr.msk.f32.gmra.mrb[10].mxu0 %vm253_vm10, %v929_v5  ;;  %732 = vmatmul.mubr.msk.f32.gmra.mrb[8].mxu1 %vm260_vm9, %v929_v5 }
  0xb1   : > { %v244_v16 = vpop.permute.xlu1 %243  ;;  %733 = vmatprep.mubr.msk.f32.mxu1 %vm261_vm11, %v929_v5  ;;  %v220_v17 = vpop.permute.xlu0 %219 }
  0xb2   : > { %vm254_vm12 = vcmp.eq.s32.totalorder %v220_v17, %v1121_v2  ;;  %vm262_vm13 = vcmp.eq.s32.totalorder %v244_v16, %v1121_v2 }
  0xb3   : > { %719 = vmatprep.mubr.msk.f32.mxu0 %vm254_vm12, %v929_v5 }
  0xb4   : > { %720 = vmatmul.mubr.msk.f32.gmra.mrb[12].mxu0 %vm254_vm12, %v929_v5  ;;  %734 = vmatmul.mubr.msk.f32.gmra.mrb[10].mxu1 %vm261_vm11, %v929_v5 }
  0xb5   : > { %v247_v18 = vpop.permute.xlu1 %246  ;;  %735 = vmatprep.mubr.msk.f32.mxu1 %vm262_vm13, %v929_v5  ;;  %v223_v19 = vpop.permute.xlu0 %222 }
  0xb6   : > { %vm255_vm14 = vcmp.eq.s32.totalorder %v223_v19, %v1121_v2  ;;  %vm263_vm15 = vcmp.eq.s32.totalorder %v247_v18, %v1121_v2 }
  0xb7   : > { %721 = vmatprep.mubr.msk.f32.mxu0 %vm255_vm14, %v929_v5 }
  0xb8   : > { %722 = vmatmul.mubr.msk.f32.gmra.mrb[14].mxu0 %vm255_vm14, %v929_v5  ;;  %736 = vmatmul.mubr.msk.f32.gmra.mrb[12].mxu1 %vm262_vm13, %v929_v5 }
  0xb9   : > { %737 = vmatprep.mubr.msk.f32.mxu1 %vm263_vm15, %v929_v5 }
  0xbc   : > { %738 = vmatmul.mubr.msk.f32.gmra.mrb[14].mxu1 %vm263_vm15, %v929_v5 }
 0x16f   : > { %v394_v20 = vpop.f32.mrb[0].mxu0 }
 0x170   : > { %489 = vst [vmem:[%s1142_s25] sm:$0xff] %v394_v20  ;;  %v396_v21 = vpop.f32.mrb[1].mxu0 }
 0x171   : > { %490 = vst [vmem:[%s1142_s25 + $0x8] sm:$0xff] %v396_v21 }
 0x173   : > { %v400_v22 = vpop.f32.mrb[2].mxu0  ;;  %v442_v23 = vpop.f32.mrb[0].mxu1 }
 0x174   : > { %491 = vst [vmem:[%s1142_s25 + $0x10] sm:$0xff] %v400_v22  ;;  %505 = vst [vmem:[%s1142_s25 + $0x80] sm:$0xff] %v442_v23  ;;  %v402_v24 = vpop.f32.mrb[3].mxu0  ;;  %v444_v25 = vpop.f32.mrb[1].mxu1 }
 0x175   : > { %492 = vst [vmem:[%s1142_s25 + $0x18] sm:$0xff] %v402_v24  ;;  %506 = vst [vmem:[%s1142_s25 + $0x88] sm:$0xff] %v444_v25 }
 0x177   : > { %v406_v26 = vpop.f32.mrb[4].mxu0  ;;  %v448_v27 = vpop.f32.mrb[2].mxu1 }
 0x178   : > { %493 = vst [vmem:[%s1142_s25 + $0x20] sm:$0xff] %v406_v26  ;;  %507 = vst [vmem:[%s1142_s25 + $0x90] sm:$0xff] %v448_v27  ;;  %v408_v28 = vpop.f32.mrb[5].mxu0  ;;  %v450_v29 = vpop.f32.mrb[3].mxu1 }
 0x179   : > { %494 = vst [vmem:[%s1142_s25 + $0x28] sm:$0xff] %v408_v28  ;;  %508 = vst [vmem:[%s1142_s25 + $0x98] sm:$0xff] %v450_v29 }
 0x17b   : > { %v412_v30 = vpop.f32.mrb[6].mxu0  ;;  %v454_v31 = vpop.f32.mrb[4].mxu1 }
 0x17c   : > { %495 = vst [vmem:[%s1142_s25 + $0x30] sm:$0xff] %v412_v30  ;;  %509 = vst [vmem:[%s1142_s25 + $0xa0] sm:$0xff] %v454_v31  ;;  %v414_v32 = vpop.f32.mrb[7].mxu0  ;;  %v456_v33 = vpop.f32.mrb[5].mxu1 }
 0x17d   : > { %496 = vst [vmem:[%s1142_s25 + $0x38] sm:$0xff] %v414_v32  ;;  %510 = vst [vmem:[%s1142_s25 + $0xa8] sm:$0xff] %v456_v33 }
 0x17f   : > { %v418_v34 = vpop.f32.mrb[8].mxu0  ;;  %v460_v35 = vpop.f32.mrb[6].mxu1 }
 0x180   : > { %497 = vst [vmem:[%s1142_s25 + $0x40] sm:$0xff] %v418_v34  ;;  %511 = vst [vmem:[%s1142_s25 + $0xb0] sm:$0xff] %v460_v35  ;;  %v420_v36 = vpop.f32.mrb[9].mxu0  ;;  %v462_v37 = vpop.f32.mrb[7].mxu1 }
 0x181   : > { %498 = vst [vmem:[%s1142_s25 + $0x48] sm:$0xff] %v420_v36  ;;  %512 = vst [vmem:[%s1142_s25 + $0xb8] sm:$0xff] %v462_v37 }
 0x183   : > { %v424_v38 = vpop.f32.mrb[10].mxu0  ;;  %v466_v39 = vpop.f32.mrb[8].mxu1 }
 0x184   : > { %499 = vst [vmem:[%s1142_s25 + $0x50] sm:$0xff] %v424_v38  ;;  %513 = vst [vmem:[%s1142_s25 + $0xc0] sm:$0xff] %v466_v39  ;;  %v426_v40 = vpop.f32.mrb[11].mxu0  ;;  %v468_v41 = vpop.f32.mrb[9].mxu1 }
 0x185   : > { %500 = vst [vmem:[%s1142_s25 + $0x58] sm:$0xff] %v426_v40  ;;  %514 = vst [vmem:[%s1142_s25 + $0xc8] sm:$0xff] %v468_v41 }
 0x187   : > { %v430_v42 = vpop.f32.mrb[12].mxu0  ;;  %v472_v43 = vpop.f32.mrb[10].mxu1 }
 0x188   : > { %501 = vst [vmem:[%s1142_s25 + $0x60] sm:$0xff] %v430_v42  ;;  %515 = vst [vmem:[%s1142_s25 + $0xd0] sm:$0xff] %v472_v43  ;;  %v432_v44 = vpop.f32.mrb[13].mxu0  ;;  %v474_v45 = vpop.f32.mrb[11].mxu1 }
 0x189   : > { %502 = vst [vmem:[%s1142_s25 + $0x68] sm:$0xff] %v432_v44  ;;  %516 = vst [vmem:[%s1142_s25 + $0xd8] sm:$0xff] %v474_v45 }
 0x18b   : > { %v436_v46 = vpop.f32.mrb[14].mxu0  ;;  %v478_v47 = vpop.f32.mrb[12].mxu1 }
 0x18c   : > { %503 = vst [vmem:[%s1142_s25 + $0x70] sm:$0xff] %v436_v46  ;;  %517 = vst [vmem:[%s1142_s25 + $0xe0] sm:$0xff] %v478_v47  ;;  %v438_v48 = vpop.f32.mrb[15].mxu0  ;;  %v480_v49 = vpop.f32.mrb[13].mxu1 }
 0x18d   : > { %504 = vst [vmem:[%s1142_s25 + $0x78] sm:$0xff] %v438_v48  ;;  %518 = vst [vmem:[%s1142_s25 + $0xe8] sm:$0xff] %v480_v49 }
 0x18f   : > { %v484_v50 = vpop.f32.mrb[14].mxu1 }
 0x190   : > { %519 = vst [vmem:[%s1142_s25 + $0xf0] sm:$0xff] %v484_v50  ;;  %v486_v51 = vpop.f32.mrb[15].mxu1 }
 0x191   : > { %520 = vst [vmem:[%s1142_s25 + $0xf8] sm:$0xff] %v486_v51 }
 0x192   : > { %861 = shalt.err (!%p858_p5)
}
 0x193   : > { %s862_s5 = scalar_lea.hbm %s1179_s28, 4096  ;;  %s866_s8 = scalar_lea.hbm %s1235_s2, 8192 }
 0x194   : > { %p863_p6 = scmp.ne.s32.totalorder %s1179_s28, %s862_s5  ;;  %p867_p10 = scmp.lt.u32.totalorder %s1179_s28, %s1235_s2 }
 0x195   : > { %p868_p11 = scmp.lt.u32.totalorder %s866_s8, %s862_s5  ;;  %p870_p13 = scmp.lt.u32.totalorder %s862_s5, %s1179_s28 }
 0x196   : > { %p864_p7 = pnand %p863_p6, %p988_p4 }
 0x197   : > { %p869_p12 = por %p868_p11, %p867_p10 }
 0x198   : > { %p865_p9 = pneg %p864_p7 }
 0x199   : > { %p871_p0 = por %p870_p13, %p869_p12 }
 0x19b   : > { %p872_p1 = pnand %p871_p0, %p865_p9 }
 0x19d   : > { %875 = shalt.err (!%p872_p1)
}
 0x19e   : > { %s931_s20 = smov 256   ;;  %s932_s24 = smov 16  }
 0x19f   : > { %787 = dma.vmem_to_hbm [thread:$0]  (%p988_p4), %s1181_s18, 4096, %s1179_s28, %s1187_s12, %s931_s20, %s931_s20, %s932_s24  }
 0x1a0 PF: > { %p793_p2 = scmp.ge.s32.totalorder %s926_s14, 2  ;;  %s553_s25 = sand.u32 1, %s906_s9  }
 0x1a1   : > { %s554_s26 = scalar_lea.sflag [#allocation3], %s553_s25 }
 0x1a2   : > { %p790_p3 = pnand %p793_p2, %p995_p8 }
 0x1a4   : > { %901 = dma.done.wait (!%p790_p3), %s554_s26, 4096  }
 0x1a5   : > { %903 = vsyncadd (!%p790_p3), %s554_s26, 4294963200  ;;  %s15_s14 = sadd.s32 1, %s926_s14   ;;  %s1238_s9 = smov %s910_s10 }
 0x1a6   : > { %p12_p5 = scmp.ge.s32.totalorder %s15_s14, 4   ;;  %s1239_s10 = smov %s914_s11 }
 0x1a7   : > { %s1240_s11 = smov %s1001_s22  ;;  %s1241_s12 = smov %s922_s13 }
 0x1a8   : > { %s1242_s13 = smov %s1244_s17  ;;  %14 = sbr.rel (!%p12_p5) target bundleno = 4 (0x4), region = 66 }
 0x1af   :  { %559 = vsyncpa [#allocation3], 1 }
 0x1b0   :  { %561 = vsyncpa [#allocation3 + $0x1], 1 }

// kernel: fc_actor_discrete_forward.2
= control target key start
LH: loop header
LB: loop body
LE: loop exit
PB: predicated region body
PF: predicated region fallthrough
CT: control target
= control target key end

     0   :  { %s1862_s30 = smov 0   ;;  %s2528_s0 = inlined_call_operand.vmem [shape: f32[256,16], index: 0, kind: input, shape index: {}]   ;;  %s2529_s1 = inlined_call_operand.vmem [shape: f32[256,128], index: 1, kind: input, shape index: {}]   ;;  %s2530_s2 = inlined_call_operand.vmem [shape: bf16[16,128], index: 2, kind: input, shape index: {}]   ;;  %s2531_s3 = inlined_call_operand.vmem [shape: f32[1,128], index: 3, kind: input, shape index: {}]   ;;  %s2532_s4 = inlined_call_operand.vmem [shape: bf16[128,64], index: 4, kind: input, shape index: {}]   ;;  %s2533_s5 = inlined_call_operand.vmem [shape: f32[1,64], index: 5, kind: input, shape index: {}]   ;;  %s2534_s6 = inlined_call_operand.vmem [shape: bf16[64,128], index: 6, kind: input, shape index: {}]   ;;  %s2535_s7 = inlined_call_operand.vmem [shape: f32[1,128], index: 7, kind: input, shape index: {}]   ;;  %s2536_s8 = inlined_call_operand.vmem [shape: s32[256,1], index: 8, kind: output, shape index: {0}]   ;;  %s2537_s9 = inlined_call_operand.vmem [shape: f32[256,128], index: 9, kind: output, shape index: {1}]  }
   0x1 LB: > { %s1561_s10 = sadd.s32 4294967295, %s1810_s30   ;;  %p1565_p0 = scmp.ge.s32.totalorder %s1810_s30, 1  ;;  %s1810_s30 = sphi %s1862_s30, %s20_s30  }
   0x2   : > { %p302_p1 = scmp.lt.s32.totalorder %s1810_s30, 3 }
   0x4   : > { %p303_p2 = pnand %p1565_p0, %p302_p1 }
   0x6   : > { %306 = sbr.rel (%p303_p2) target bundleno = 1154 (0x482), region = 52 }
   0xd   : > { %v1727_v0 = vld [vmem:[%s2530_s2] sm:$0xff]   ;;  %s1566_s13 = sshll.u32 %s1561_s10, 4  ;;  %v1729_v2 = vld [vmem:[%s2532_s4 + $0x8] sm:$0xff]   ;;  %v1730_v3 = vld [vmem:[%s2532_s4 + $0x10] sm:$0xff]   ;;  %vm412_vm0 = vcmask 130048   ;;  %vm789_vm1 = vcmask 523264  }
   0xe   : > { %p349_p3 = scmp.lt.s32.totalorder %s1566_s13, 31  ;;  %1645 = vmatprep.subr.bf16.mxu0 %v1727_v0  ;;  %v1728_v1 = vld [vmem:[%s2532_s4] sm:$0xff]   ;;  %v1731_v13 = vld [vmem:[%s2532_s4 + $0x18] sm:$0xff]   ;;  %v1733_v21 = vld [vmem:[%s2532_s4 + $0x28] sm:$0xff]  }
   0xf   : > { %1646 = vmatpush3.bf16.msra.mxu0 %v1727_v0  ;;  %1663 = vmatprep.subr.bf16.mxu1 %v1728_v1  ;;  %v1732_v18 = vld [vmem:[%s2532_s4 + $0x20] sm:$0xff]   ;;  %v1734_v31 = vld [vmem:[%s2532_s4 + $0x30] sm:$0xff]   ;;  %v1735_v32 = vld [vmem:[%s2532_s4 + $0x38] sm:$0xff]  }
  0x10   : > { %s2584_s13 = smov (!%p349_p3, %s1566_s13), 31  ;;  %1664 = vmatpush3.bf16.msra.mxu1 %v1728_v1  ;;  %v1736_v33 = vld [vmem:[%s2534_s6] sm:$0xff]   ;;  %v1737_v34 = vld [vmem:[%s2534_s6 + $0x8] sm:$0xff]   ;;  %v1738_v35 = vld [vmem:[%s2534_s6 + $0x10] sm:$0xff]  }
  0x11   : > { %s1879_s18 = sshll.u32 %s2584_s13, 3  ;;  %1665 = vmatprep.subr.bf16.mxu1 %v1729_v2  ;;  %1695 = vmatprep.subr.bf16.mxu0 %v1736_v33  ;;  %v1574_v36 = vld [vmem:[%s2531_s3] ss:$0 sm:$0xff] }
  0x12   : > { %s1885_s21 = scalar_lea.vmem %s2528_s0, %s1879_s18  ;;  %s1959_s29 = scalar_lea.vmem %s2529_s1, %s1879_s18 }
  0x13   : > { %v373_v4 = vld [vmem:[%s1885_s21] sm:$0xff]  ;;  %v374_v5 = vld [vmem:[%s1885_s21 + $0x8] sm:$0xff]  ;;  %v375_v6 = vld [vmem:[%s1885_s21 + $0x10] sm:$0xff]  ;;  %s2390_s14 = scalar_lea.vmem %s2537_s9, %s1879_s18  ;;  %s2478_s17 = scalar_lea.vmem %s2536_s8, %s1879_s18 }
  0x14   : > { %v389_v7 = vpack.c.bf16 %v374_v5, %v373_v4  ;;  %v376_v8 = vld [vmem:[%s1885_s21 + $0x18] sm:$0xff]  ;;  %v377_v9 = vld [vmem:[%s1885_s21 + $0x20] sm:$0xff]  ;;  %v378_v10 = vld [vmem:[%s1885_s21 + $0x28] sm:$0xff]  ;;  %1666 = vmatpush3.bf16.msra.mxu1 %v1729_v2 }
  0x15   : > { %v390_v11 = vpack.c.bf16 %v376_v8, %v375_v6  ;;  %v391_v12 = vpack.c.bf16 %v378_v10, %v377_v9  ;;  %1667 = vmatprep.subr.bf16.mxu1 %v1730_v3  ;;  %v379_v14 = vld [vmem:[%s1885_s21 + $0x30] sm:$0xff]  ;;  %v380_v15 = vld [vmem:[%s1885_s21 + $0x38] sm:$0xff]  ;;  %v381_v16 = vld [vmem:[%s1885_s21 + $0x40] sm:$0xff] }
  0x16   : > { %1647 = vmatprep.mubr.msk.bf16.mxu0 %vm412_vm0, %v389_v7  ;;  %v382_v17 = vld [vmem:[%s1885_s21 + $0x48] sm:$0xff]  ;;  %v392_v19 = vpack.c.bf16 %v380_v15, %v379_v14  ;;  %v383_v22 = vld [vmem:[%s1885_s21 + $0x50] sm:$0xff]  ;;  %v384_v23 = vld [vmem:[%s1885_s21 + $0x58] sm:$0xff] }
  0x17   : > { %1648 = vmatmul.mubr.msk.bf16.vlgmr.msra.gmra.mrb[0].mxu0 %vm412_vm0, %v390_v11  ;;  %v393_v20 = vpack.c.bf16 %v382_v17, %v381_v16  ;;  %v385_v24 = vld [vmem:[%s1885_s21 + $0x60] sm:$0xff]  ;;  %v386_v25 = vld [vmem:[%s1885_s21 + $0x68] sm:$0xff]  ;;  %v394_v26 = vpack.c.bf16 %v384_v23, %v383_v22  ;;  %v387_v28 = vld [vmem:[%s1885_s21 + $0x70] sm:$0xff] }
  0x18   : > { %1651 = vmatprep.mubr.msk.bf16.mxu0 %vm412_vm0, %v391_v12  ;;  %1668 = vmatpush3.bf16.msra.mxu1 %v1730_v3  ;;  %v395_v27 = vpack.c.bf16 %v386_v25, %v385_v24  ;;  %v388_v29 = vld [vmem:[%s1885_s21 + $0x78] sm:$0xff] }
  0x19   : > { %1669 = vmatprep.subr.bf16.mxu1 %v1731_v13  ;;  %v396_v30 = vpack.c.bf16 %v388_v29, %v387_v28  ;;  %1696 = vmatpush3.bf16.msra.mxu0 %v1736_v33  ;;  %v1739_v29 = vld [vmem:[%s2534_s6 + $0x18] sm:$0xff]  }
  0x1a   : > { %1697 = vmatprep.subr.bf16.mxu0 %v1737_v34 }
  0x1c   : > { %1670 = vmatpush3.bf16.msra.mxu1 %v1731_v13 }
  0x1d   : > { %1671 = vmatprep.subr.bf16.mxu1 %v1732_v18  ;;  %1698 = vmatpush3.bf16.msra.mxu0 %v1737_v34 }
  0x1e   : > { %1699 = vmatprep.subr.bf16.mxu0 %v1738_v35 }
  0x1f   : > { %1652 = vmatmul.mubr.msk.bf16.gmra.mrb[4].mxu0 %vm412_vm0, %v392_v19 }
  0x20   : > { %1655 = vmatprep.mubr.msk.bf16.mxu0 %vm412_vm0, %v393_v20  ;;  %1672 = vmatpush3.bf16.msra.mxu1 %v1732_v18 }
  0x21   : > { %1673 = vmatprep.subr.bf16.mxu1 %v1733_v21  ;;  %1700 = vmatpush3.bf16.msra.mxu0 %v1738_v35 }
  0x22   : > { %1701 = vmatprep.subr.bf16.mxu0 %v1739_v29 }
  0x24   : > { %1674 = vmatpush3.bf16.msra.mxu1 %v1733_v21 }
  0x25   : > { %1675 = vmatprep.subr.bf16.mxu1 %v1734_v31  ;;  %1702 = vmatpush3.bf16.msra.mxu0 %v1739_v29 }
  0x27   : > { %1656 = vmatmul.mubr.msk.bf16.gmra.mrb[8].mxu0 %vm412_vm0, %v394_v26 }
  0x28   : > { %1659 = vmatprep.mubr.msk.bf16.mxu0 %vm412_vm0, %v395_v27  ;;  %1676 = vmatpush3.bf16.msra.mxu1 %v1734_v31 }
  0x29   : > { %1677 = vmatprep.subr.bf16.mxu1 %v1735_v32 }
  0x2c   : > { %1678 = vmatpush3.bf16.msra.mxu1 %v1735_v32 }
  0x2f   : > { %1660 = vmatmul.mubr.msk.bf16.gmra.mrb[12].mxu0 %vm412_vm0, %v396_v30  ;;  %v1584_v30 = vld [vmem:[%s2533_s5] ss:$0 sm:$0xff] }
  0xea   : > { %v1649_v37 = vpop.f32.mrb[0].mxu0 }
  0xeb   : > { %v480_v38 = vadd.f32 %v1649_v37, %v1574_v36  ;;  %v471_v39 = vpop.f32.mrb[1].mxu0 }
  0xec   : > { %v472_v40 = vadd.f32 %v1574_v36, %v471_v39  ;;  %v1650_v41 = vpop.f32.mrb[2].mxu0 }
  0xed   : > { %v483_v42 = vadd.f32 %v1650_v41, %v1574_v36  ;;  %v474_v43 = vpop.f32.mrb[3].mxu0  ;;  %v536_v45 = vmax.f32 %v480_v38, 0.0 }
  0xee   : > { %v475_v44 = vadd.f32 %v1574_v36, %v474_v43  ;;  %v534_v47 = vmax.f32 %v472_v40, 0.0 }
  0xef   : > { %v537_v46 = vmax.f32 %v483_v42, 0.0 }
  0xf0   : > { %v535_v48 = vmax.f32 %v475_v44, 0.0 }
  0xf1   : > { %v551_v49 = vpack.c.bf16 %v537_v46, %v536_v45 }
  0xf2   : > { %v1653_v50 = vpop.f32.mrb[4].mxu0  ;;  %v550_v51 = vpack.c.bf16 %v535_v48, %v534_v47 }
  0xf3   : > { %v496_v52 = vadd.f32 %v1653_v50, %v1574_v36  ;;  %v487_v53 = vpop.f32.mrb[5].mxu0 }
  0xf4   : > { %v488_v54 = vadd.f32 %v1574_v36, %v487_v53  ;;  %v1654_v55 = vpop.f32.mrb[6].mxu0  ;;  %1679 = vmatprep.mubr.bf16.mxu1 %v550_v51 }
  0xf5   : > { %v540_v56 = vmax.f32 %v496_v52, 0.0  ;;  %v499_v57 = vadd.f32 %v1654_v55, %v1574_v36  ;;  %v490_v58 = vpop.f32.mrb[7].mxu0  ;;  %1680 = vmatmul.mubr.bf16.vlgmr.msra.gmra.mrb[0].mxu1 %v551_v49 }
  0xf6   : > { %v491_v59 = vadd.f32 %v1574_v36, %v490_v58  ;;  %v538_v61 = vmax.f32 %v488_v54, 0.0 }
  0xf7   : > { %v541_v60 = vmax.f32 %v499_v57, 0.0 }
  0xf8   : > { %v539_v62 = vmax.f32 %v491_v59, 0.0 }
  0xf9   : > { %v553_v63 = vpack.c.bf16 %v541_v60, %v540_v56 }
  0xfa   : > { %v552_v0 = vpack.c.bf16 %v539_v62, %v538_v61  ;;  %v1657_v1 = vpop.f32.mrb[8].mxu0 }
  0xfb   : > { %v512_v2 = vadd.f32 %v1657_v1, %v1574_v36  ;;  %v503_v3 = vpop.f32.mrb[9].mxu0 }
  0xfc   : > { %v504_v4 = vadd.f32 %v1574_v36, %v503_v3  ;;  %v1658_v5 = vpop.f32.mrb[10].mxu0  ;;  %1683 = vmatprep.mubr.bf16.mxu1 %v552_v0 }
  0xfd   : > { %v544_v6 = vmax.f32 %v512_v2, 0.0  ;;  %v515_v7 = vadd.f32 %v1658_v5, %v1574_v36  ;;  %v506_v8 = vpop.f32.mrb[11].mxu0  ;;  %1684 = vmatmul.mubr.bf16.gmra.mrb[4].mxu1 %v553_v63 }
  0xfe   : > { %v507_v9 = vadd.f32 %v1574_v36, %v506_v8  ;;  %v542_v11 = vmax.f32 %v504_v4, 0.0 }
  0xff   : > { %v545_v10 = vmax.f32 %v515_v7, 0.0 }
 0x100   : > { %v543_v12 = vmax.f32 %v507_v9, 0.0 }
 0x101   : > { %v555_v13 = vpack.c.bf16 %v545_v10, %v544_v6 }
 0x102   : > { %v554_v14 = vpack.c.bf16 %v543_v12, %v542_v11  ;;  %v1661_v15 = vpop.f32.mrb[12].mxu0 }
 0x103   : > { %v528_v16 = vadd.f32 %v1661_v15, %v1574_v36  ;;  %v519_v17 = vpop.f32.mrb[13].mxu0 }
 0x104   : > { %v520_v18 = vadd.f32 %v1574_v36, %v519_v17  ;;  %v1662_v19 = vpop.f32.mrb[14].mxu0  ;;  %1687 = vmatprep.mubr.bf16.mxu1 %v554_v14 }
 0x105   : > { %v548_v20 = vmax.f32 %v528_v16, 0.0  ;;  %v531_v21 = vadd.f32 %v1662_v19, %v1574_v36  ;;  %v522_v22 = vpop.f32.mrb[15].mxu0  ;;  %1688 = vmatmul.mubr.bf16.gmra.mrb[8].mxu1 %v555_v13 }
 0x106   : > { %v523_v23 = vadd.f32 %v1574_v36, %v522_v22  ;;  %v546_v25 = vmax.f32 %v520_v18, 0.0 }
 0x107   : > { %v549_v24 = vmax.f32 %v531_v21, 0.0 }
 0x108   : > { %v547_v26 = vmax.f32 %v523_v23, 0.0  ;;  %v1964_v23 = vld [vmem:[%s2535_s7] ss:$0 sm:$0xff] }
 0x109   : > { %v557_v27 = vpack.c.bf16 %v549_v24, %v548_v20 }
 0x10a   : > { %v556_v28 = vpack.c.bf16 %v547_v26, %v546_v25  ;;  %v1091_v25 = vld [vmem:[%s1959_s29 + $0x10] sm:$0xff] }
 0x10c   : > { %1691 = vmatprep.mubr.bf16.mxu1 %v556_v28  ;;  %v1089_v28 = vld [vmem:[%s1959_s29] sm:$0xff] }
 0x10d   : > { %1692 = vmatmul.mubr.bf16.gmra.mrb[12].mxu1 %v557_v27 }
 0x1c8   : > { %v1681_v31 = vpop.f32.mrb[0].mxu1 }
 0x1c9   : > { %v672_v32 = vadd.f32 %v1681_v31, %v1584_v30  ;;  %v663_v33 = vpop.f32.mrb[1].mxu1 }
 0x1ca   : > { %v664_v34 = vadd.f32 %v1584_v30, %v663_v33  ;;  %v1682_v35 = vpop.f32.mrb[2].mxu1 }
 0x1cb   : > { %v675_v36 = vadd.f32 %v1682_v35, %v1584_v30  ;;  %v666_v37 = vpop.f32.mrb[3].mxu1  ;;  %v728_v39 = vmax.f32 %v672_v32, 0.0 }
 0x1cc   : > { %v667_v38 = vadd.f32 %v1584_v30, %v666_v37  ;;  %v726_v41 = vmax.f32 %v664_v34, 0.0  ;;  %v1090_v37 = vld [vmem:[%s1959_s29 + $0x8] sm:$0xff] }
 0x1cd   : > { %v729_v40 = vmax.f32 %v675_v36, 0.0  ;;  %v1092_v36 = vld [vmem:[%s1959_s29 + $0x18] sm:$0xff] }
 0x1ce   : > { %v727_v42 = vmax.f32 %v667_v38, 0.0 }
 0x1cf   : > { %v743_v43 = vpack.c.bf16 %v729_v40, %v728_v39 }
 0x1d0   : > { %v742_v44 = vpack.c.bf16 %v727_v42, %v726_v41  ;;  %v1685_v45 = vpop.f32.mrb[4].mxu1  ;;  %v1095_v41 = vld [vmem:[%s1959_s29 + $0x30] sm:$0xff] }
 0x1d1   : > { %v688_v46 = vadd.f32 %v1685_v45, %v1584_v30  ;;  %v679_v47 = vpop.f32.mrb[5].mxu1  ;;  %v1096_v45 = vld [vmem:[%s1959_s29 + $0x38] sm:$0xff] }
 0x1d2   : > { %v680_v48 = vadd.f32 %v1584_v30, %v679_v47  ;;  %v1686_v49 = vpop.f32.mrb[6].mxu1  ;;  %1703 = vmatprep.mubr.msk.bf16.mxu0 %vm789_vm1, %v742_v44 }
 0x1d3   : > { %v691_v50 = vadd.f32 %v1686_v49, %v1584_v30  ;;  %v682_v51 = vpop.f32.mrb[7].mxu1  ;;  %1704 = vmatmul.mubr.msk.bf16.vlgmr.msra.gmra.mrb[16].mxu0 %vm789_vm1, %v743_v43  ;;  %v732_v53 = vmax.f32 %v688_v46, 0.0 }
 0x1d4   : > { %v683_v52 = vadd.f32 %v1584_v30, %v682_v51  ;;  %v730_v55 = vmax.f32 %v680_v48, 0.0 }
 0x1d5   : > { %v733_v54 = vmax.f32 %v691_v50, 0.0 }
 0x1d6   : > { %v731_v56 = vmax.f32 %v683_v52, 0.0  ;;  %v1093_v52 = vld [vmem:[%s1959_s29 + $0x20] sm:$0xff] }
 0x1d7   : > { %v745_v57 = vpack.c.bf16 %v733_v54, %v732_v53  ;;  %v1094_v53 = vld [vmem:[%s1959_s29 + $0x28] sm:$0xff] }
 0x1d8   : > { %v744_v58 = vpack.c.bf16 %v731_v56, %v730_v55  ;;  %v1689_v59 = vpop.f32.mrb[8].mxu1  ;;  %v1099_v56 = vld [vmem:[%s1959_s29 + $0x50] sm:$0xff] }
 0x1d9   : > { %v704_v60 = vadd.f32 %v1689_v59, %v1584_v30  ;;  %v695_v61 = vpop.f32.mrb[9].mxu1 }
 0x1da   : > { %v696_v62 = vadd.f32 %v1584_v30, %v695_v61  ;;  %v1690_v63 = vpop.f32.mrb[10].mxu1  ;;  %1707 = vmatprep.mubr.msk.bf16.mxu0 %vm789_vm1, %v744_v58  ;;  %v1100_v61 = vld [vmem:[%s1959_s29 + $0x58] sm:$0xff] }
 0x1db   : > { %v707_v0 = vadd.f32 %v1690_v63, %v1584_v30  ;;  %v698_v1 = vpop.f32.mrb[11].mxu1  ;;  %1708 = vmatmul.mubr.msk.bf16.gmra.mrb[20].mxu0 %vm789_vm1, %v745_v57  ;;  %v736_v3 = vmax.f32 %v704_v60, 0.0 }
 0x1dc   : > { %v699_v2 = vadd.f32 %v1584_v30, %v698_v1  ;;  %v734_v5 = vmax.f32 %v696_v62, 0.0 }
 0x1dd   : > { %v737_v4 = vmax.f32 %v707_v0, 0.0 }
 0x1de   : > { %v735_v6 = vmax.f32 %v699_v2, 0.0 }
 0x1df   : > { %v747_v7 = vpack.c.bf16 %v737_v4, %v736_v3  ;;  %v1097_v4 = vld [vmem:[%s1959_s29 + $0x40] sm:$0xff] }
 0x1e0   : > { %v746_v8 = vpack.c.bf16 %v735_v6, %v734_v5  ;;  %v1693_v9 = vpop.f32.mrb[12].mxu1  ;;  %v1098_v5 = vld [vmem:[%s1959_s29 + $0x48] sm:$0xff] }
 0x1e1   : > { %v720_v10 = vadd.f32 %v1693_v9, %v1584_v30  ;;  %v711_v11 = vpop.f32.mrb[13].mxu1 }
 0x1e2   : > { %v712_v12 = vadd.f32 %v1584_v30, %v711_v11  ;;  %v1694_v13 = vpop.f32.mrb[14].mxu1  ;;  %1711 = vmatprep.mubr.msk.bf16.mxu0 %vm789_vm1, %v746_v8 }
 0x1e3   : > { %v723_v14 = vadd.f32 %v1694_v13, %v1584_v30  ;;  %v714_v15 = vpop.f32.mrb[15].mxu1  ;;  %1712 = vmatmul.mubr.msk.bf16.gmra.mrb[24].mxu0 %vm789_vm1, %v747_v7  ;;  %v740_v17 = vmax.f32 %v720_v10, 0.0  ;;  %v1101_v10 = vld [vmem:[%s1959_s29 + $0x60] sm:$0xff] }
 0x1e4   : > { %v715_v16 = vadd.f32 %v1584_v30, %v714_v15  ;;  %v738_v19 = vmax.f32 %v712_v12, 0.0 }
 0x1e5   : > { %v741_v18 = vmax.f32 %v723_v14, 0.0  ;;  %v1102_v14 = vld [vmem:[%s1959_s29 + $0x68] sm:$0xff] }
 0x1e6   : > { %v739_v20 = vmax.f32 %v715_v16, 0.0 }
 0x1e7   : > { %v749_v21 = vpack.c.bf16 %v741_v18, %v740_v17  ;;  %v1103_v18 = vld [vmem:[%s1959_s29 + $0x70] sm:$0xff] }
 0x1e8   : > { %v748_v22 = vpack.c.bf16 %v739_v20, %v738_v19 }
 0x1ea   : > { %1715 = vmatprep.mubr.msk.bf16.mxu0 %vm789_vm1, %v748_v22 }
 0x1eb   : > { %1716 = vmatmul.mubr.msk.bf16.gmra.mrb[28].mxu0 %vm789_vm1, %v749_v21  ;;  %v1104_v21 = vld [vmem:[%s1959_s29 + $0x78] sm:$0xff] }
 0x2a6   : > { %v1705_v24 = vpop.f32.mrb[16].mxu0 }
 0x2a7   : > { %v1968_v26 = vadd.f32 %v1705_v24, %v1964_v23  ;;  %v848_v27 = vpop.f32.mrb[17].mxu0 }
 0x2a8   : > { %v1972_v29 = vadd.f32 %v1964_v23, %v848_v27  ;;  %v1706_v30 = vpop.f32.mrb[18].mxu0 }
 0x2a9   : > { %v1975_v31 = vadd.f32 %v1706_v30, %v1964_v23  ;;  %v851_v32 = vpop.f32.mrb[19].mxu0  ;;  %v1978_v33 = vadd.f32 %v1091_v25, %v1968_v26 }
 0x2aa   : > { %v1981_v34 = vadd.f32 %v1964_v23, %v851_v32  ;;  %v1984_v35 = vadd.f32 %v1089_v28, %v1972_v29 }
 0x2ab   : > { %2553 = vst [vmem:[#allocation2_spill] sm:$0xff] %v1975_v31  ;;  %1125 = vmax.xlane.f32.xlu1 %v1978_v33  ;;  %v1991_v38 = vadd.f32 %v1092_v36, %v1975_v31 }
 0x2ac   : > { %1121 = vmax.xlane.f32.xlu0 %v1984_v35  ;;  %v1994_v40 = vadd.f32 %v1090_v37, %v1981_v34 }
 0x2ae   : > { %v1709_v39 = vpop.f32.mrb[20].mxu0 }
 0x2af   : > { %v1998_v42 = vadd.f32 %v1709_v39, %v1964_v23  ;;  %1127 = vmax.xlane.f32.xlu1 %v1991_v38  ;;  %v864_v43 = vpop.f32.mrb[21].mxu0 }
 0x2b0   : > { %v1710_v44 = vpop.f32.mrb[22].mxu0  ;;  %1123 = vmax.xlane.f32.xlu0 %v1994_v40  ;;  %v2010_v49 = vadd.f32 %v1964_v23, %v864_v43 }
 0x2b1   : > { %2554 = vst [vmem:[#allocation3_spill] sm:$0xff] %v1998_v42  ;;  %v2004_v46 = vadd.f32 %v1710_v44, %v1964_v23  ;;  %v867_v47 = vpop.f32.mrb[23].mxu0  ;;  %v2007_v48 = vadd.f32 %v1095_v41, %v1998_v42 }
 0x2b2   : > { %2556 = vst [vmem:[#allocation5_spill] sm:$0xff] %v2010_v49  ;;  %v2013_v50 = vadd.f32 %v1964_v23, %v867_v47  ;;  %v2023_v55 = vadd.f32 %v1093_v52, %v2010_v49 }
 0x2b3   : > { %2555 = vst [vmem:[#allocation4_spill] sm:$0xff] %v2004_v46  ;;  %v2016_v51 = vadd.f32 %v1096_v45, %v2004_v46 }
 0x2b4   : > { %2557 = vst [vmem:[#allocation6_spill] sm:$0xff] %v2013_v50  ;;  %1133 = vmax.xlane.f32.xlu0 %v2007_v48  ;;  %v2030_v59 = vadd.f32 %v1094_v53, %v2013_v50 }
 0x2b5   : > { %1135 = vmax.xlane.f32.xlu1 %v2016_v51 }
 0x2b6   : > { %v1713_v54 = vpop.f32.mrb[24].mxu0 }
 0x2b7   : > { %v2027_v57 = vadd.f32 %v1713_v54, %v1964_v23  ;;  %v880_v58 = vpop.f32.mrb[25].mxu0 }
 0x2b8   : > { %v1714_v60 = vpop.f32.mrb[26].mxu0  ;;  %1129 = vmax.xlane.f32.xlu0 %v2023_v55  ;;  %v2042_v1 = vadd.f32 %v1964_v23, %v880_v58 }
 0x2b9   : > { %2558 = vst [vmem:[#allocation7_spill] sm:$0xff] %v2027_v57  ;;  %v2035_v62 = vadd.f32 %v1714_v60, %v1964_v23  ;;  %v883_v63 = vpop.f32.mrb[27].mxu0  ;;  %1131 = vmax.xlane.f32.xlu1 %v2030_v59  ;;  %v2039_v0 = vadd.f32 %v1099_v56, %v2027_v57 }
 0x2ba   : > { %2560 = vst [vmem:[#allocation9_spill] sm:$0xff] %v2042_v1  ;;  %v2045_v2 = vadd.f32 %v1964_v23, %v883_v63  ;;  %v2055_v7 = vadd.f32 %v1097_v4, %v2042_v1 }
 0x2bb   : > { %2559 = vst [vmem:[#allocation8_spill] sm:$0xff] %v2035_v62  ;;  %v2048_v3 = vadd.f32 %v1100_v61, %v2035_v62 }
 0x2bc   : > { %2561 = vst [vmem:[#allocation10_spill] sm:$0xff] %v2045_v2  ;;  %1141 = vmax.xlane.f32.xlu0 %v2039_v0  ;;  %v2058_v9 = vadd.f32 %v1098_v5, %v2045_v2 }
 0x2bd   : > { %1143 = vmax.xlane.f32.xlu1 %v2048_v3 }
 0x2be   : > { %v1717_v6 = vpop.f32.mrb[28].mxu0 }
 0x2bf   : > { %v896_v8 = vpop.f32.mrb[29].mxu0  ;;  %v2068_v15 = vadd.f32 %v1717_v6, %v1964_v23 }
 0x2c0   : > { %v2062_v11 = vadd.f32 %v1964_v23, %v896_v8  ;;  %v1718_v12 = vpop.f32.mrb[30].mxu0  ;;  %1137 = vmax.xlane.f32.xlu0 %v2055_v7 }
 0x2c1   : > { %v899_v13 = vpop.f32.mrb[31].mxu0  ;;  %1139 = vmax.xlane.f32.xlu1 %v2058_v9  ;;  %2563 = vst [vmem:[#allocation12_spill] sm:$0xff] %v2068_v15  ;;  %v2078_v19 = vadd.f32 %v1718_v12, %v1964_v23  ;;  %v2087_v22 = vadd.f32 %v1103_v18, %v2068_v15 }
 0x2c2   : > { %2562 = vst [vmem:[#allocation11_spill] sm:$0xff] %v2062_v11  ;;  %v2071_v16 = vadd.f32 %v1964_v23, %v899_v13  ;;  %v2074_v17 = vadd.f32 %v1101_v10, %v2062_v11  ;;  %v911_v23 = vlaneseq }
 0x2c3   : > { %v2091_v24 = vadd.f32 %v1104_v21, %v2078_v19 }
 0x2c4   : > { %2564 = vst [vmem:[#allocation13_spill] sm:$0xff] %v2071_v16  ;;  %1145 = vmax.xlane.f32.xlu0 %v2074_v17  ;;  %v2082_v20 = vadd.f32 %v1102_v14, %v2071_v16  ;;  %v2110_v25 = vand.u32 127, %v911_v23 }
 0x2c6   : > { %1147 = vmax.xlane.f32.xlu1 %v2082_v20 }
 0x2c8   : > { %1149 = vmax.xlane.f32.xlu0 %v2087_v22 }
 0x2ca   : > { %1151 = vmax.xlane.f32.xlu1 %v2091_v24 }
 0x2cc   : > { %913 = vmax.xlane.f32.xlu0 %v1972_v29 }
 0x2ce   : > { %915 = vmax.xlane.f32.xlu1 %v1981_v34 }
 0x2d0   : > { %917 = vmax.xlane.f32.xlu0 %v1968_v26 }
 0x2d2   : > { %919 = vmax.xlane.f32.xlu1 %v1975_v31 }
 0x2d4   : > { %921 = vmax.xlane.f32.xlu0 %v2010_v49 }
 0x2d6   : > { %923 = vmax.xlane.f32.xlu1 %v2013_v50 }
 0x2d8   : > { %925 = vmax.xlane.f32.xlu0 %v1998_v42 }
 0x2da   : > { %927 = vmax.xlane.f32.xlu1 %v2004_v46 }
 0x2dc   : > { %929 = vmax.xlane.f32.xlu0 %v2042_v1 }
 0x2de   : > { %931 = vmax.xlane.f32.xlu1 %v2045_v2 }
 0x2e0   : > { %933 = vmax.xlane.f32.xlu0 %v2027_v57 }
 0x2e2   : > { %935 = vmax.xlane.f32.xlu1 %v2035_v62 }
 0x2e4   : > { %937 = vmax.xlane.f32.xlu0 %v2062_v11 }
 0x2e6   : > { %939 = vmax.xlane.f32.xlu1 %v2071_v16 }
 0x2e8   : > { %941 = vmax.xlane.f32.xlu0 %v2068_v15 }
 0x2ea   : > { %943 = vmax.xlane.f32.xlu1 %v2078_v19 }
 0x338   : > { %v1126_v27 = vpop.xlane.xlu1 %1125 }
 0x339   : > { %vm1155_vm2 = vcmp.ge.f32.partialorder %v1978_v33, %v1126_v27  ;;  %v1122_v28 = vpop.xlane.xlu0 %1121 }
 0x33a   : > { %v2114_v30 = vsel %vm1155_vm2, %v2110_v25, 128  ;;  %vm1153_vm3 = vcmp.ge.f32.partialorder %v1984_v35, %v1122_v28 }
 0x33b   : > { %v2118_v32 = vsel %vm1153_vm3, %v2110_v25, 128  ;;  %v1214_v36 = vshra.s32 %v2114_v30, 16 }
 0x33c   : > { %v1128_v37 = vpop.xlane.xlu1 %1127  ;;  %v1186_v43 = vshra.s32 %v2118_v32, 16 }
 0x33d   : > { %vm1156_vm4 = vcmp.ge.f32.partialorder %v1991_v38, %v1128_v37  ;;  %v1124_v39 = vpop.xlane.xlu0 %1123  ;;  %v2122_v41 = vcvt.s32.f32 %v1214_v36 }
 0x33e   : > { %v2126_v33 = vsel %vm1156_vm4, %v2110_v25, 128  ;;  %vm1154_vm5 = vcmp.ge.f32.partialorder %v1994_v40, %v1124_v39  ;;  %v2136_v38 = vcvt.s32.f32 %v1186_v43 }
 0x33f   : > { %v2130_v35 = vsel %vm1154_vm5, %v2110_v25, 128  ;;  %1217 = vmin.xlane.f32.xlu0 %v2122_v41  ;;  %v1228_v44 = vshra.s32 %v2126_v33, 16 }
 0x340   : > { %v1200_v52 = vshra.s32 %v2130_v35, 16 }
 0x341   : > { %v1134_v45 = vpop.xlane.xlu0 %1133  ;;  %v2134_v47 = vcvt.s32.f32 %v1228_v44 }
 0x342   : > { %vm1159_vm6 = vcmp.ge.f32.partialorder %v2007_v48, %v1134_v45  ;;  %v1136_v53 = vpop.xlane.xlu1 %1135  ;;  %v2150_v60 = vcvt.s32.f32 %v1200_v52 }
 0x343   : > { %v2141_v54 = vsel %vm1159_vm6, %v2110_v25, 128  ;;  %vm1160_vm7 = vcmp.ge.f32.partialorder %v2016_v51, %v1136_v53  ;;  %1231 = vmin.xlane.f32.xlu1 %v2134_v47  ;;  %1189 = vmin.xlane.f32.xlu0 %v2136_v38 }
 0x344   : > { %v2147_v40 = vsel %vm1160_vm7, %v2110_v25, 128  ;;  %v1270_v56 = vshra.s32 %v2141_v54, 16 }
 0x345   : > { %v1130_v58 = vpop.xlane.xlu0 %1129  ;;  %v1284_v48 = vshra.s32 %v2147_v40, 16 }
 0x346   : > { %vm1157_vm8 = vcmp.ge.f32.partialorder %v2023_v55, %v1130_v58  ;;  %v1132_v61 = vpop.xlane.xlu1 %1131  ;;  %v2154_v63 = vcvt.s32.f32 %v1270_v56 }
 0x347   : > { %v2157_v51 = vsel %vm1157_vm8, %v2110_v25, 128  ;;  %vm1158_vm9 = vcmp.ge.f32.partialorder %v2030_v59, %v1132_v61  ;;  %1203 = vmin.xlane.f32.xlu1 %v2150_v60  ;;  %v2166_v8 = vcvt.s32.f32 %v1284_v48 }
 0x348   : > { %v2162_v4 = vsel %vm1158_vm9, %v2110_v25, 128  ;;  %1273 = vmin.xlane.f32.xlu0 %v2154_v63  ;;  %v1242_v5 = vshra.s32 %v2157_v51, 16 }
 0x349   : > { %v1142_v6 = vpop.xlane.xlu0 %1141  ;;  %v1256_v55 = vshra.s32 %v2162_v4, 16 }
 0x34a   : > { %vm1163_vm10 = vcmp.ge.f32.partialorder %v2039_v0, %v1142_v6  ;;  %v1144_v10 = vpop.xlane.xlu1 %1143  ;;  %v2170_v12 = vcvt.s32.f32 %v1242_v5 }
 0x34b   : > { %v2173_v59 = vsel %vm1163_vm10, %v2110_v25, 128  ;;  %vm1164_vm11 = vcmp.ge.f32.partialorder %v2048_v3, %v1144_v10  ;;  %1287 = vmin.xlane.f32.xlu1 %v2166_v8  ;;  %v2182_v21 = vcvt.s32.f32 %v1256_v55 }
 0x34c   : > { %v2178_v13 = vsel %vm1164_vm11, %v2110_v25, 128  ;;  %1245 = vmin.xlane.f32.xlu0 %v2170_v12  ;;  %v1326_v14 = vshra.s32 %v2173_v59, 16 }
 0x34d   : > { %v1138_v18 = vpop.xlane.xlu0 %1137  ;;  %v1340_v0 = vshra.s32 %v2178_v13, 16 }
 0x34e   : > { %vm1161_vm12 = vcmp.ge.f32.partialorder %v2055_v7, %v1138_v18  ;;  %v1140_v23 = vpop.xlane.xlu1 %1139  ;;  %v2186_v27 = vcvt.s32.f32 %v1326_v14 }
 0x34f   : > { %v2189_v3 = vsel %vm1161_vm12, %v2110_v25, 128  ;;  %vm1162_vm13 = vcmp.ge.f32.partialorder %v2058_v9, %v1140_v23  ;;  %1259 = vmin.xlane.f32.xlu1 %v2182_v21  ;;  %v2198_v39 = vcvt.s32.f32 %v1340_v0 }
 0x350   : > { %v2194_v28 = vsel %vm1162_vm13, %v2110_v25, 128  ;;  %1329 = vmin.xlane.f32.xlu0 %v2186_v27  ;;  %v1298_v36 = vshra.s32 %v2189_v3, 16 }
 0x351   : > { %v1146_v37 = vpop.xlane.xlu0 %1145  ;;  %v1312_v7 = vshra.s32 %v2194_v28, 16 }
 0x352   : > { %vm1165_vm14 = vcmp.ge.f32.partialorder %v2074_v17, %v1146_v37  ;;  %v2202_v43 = vcvt.s32.f32 %v1298_v36 }
 0x353   : > { %v2205_v9 = vsel %vm1165_vm14, %v2110_v25, 128  ;;  %v1148_v44 = vpop.xlane.xlu1 %1147  ;;  %1343 = vmin.xlane.f32.xlu1 %v2198_v39  ;;  %v2214_v56 = vcvt.s32.f32 %v1312_v7 }
 0x354   : > { %vm1166_vm15 = vcmp.ge.f32.partialorder %v2082_v20, %v1148_v44  ;;  %1301 = vmin.xlane.f32.xlu0 %v2202_v43  ;;  %v1354_v45 = vshra.s32 %v2205_v9, 16 }
 0x355   : > { %v2212_v52 = vsel %vm1166_vm15, %v2110_v25, 128  ;;  %v1150_v53 = vpop.xlane.xlu0 %1149 }
 0x356   : > { %vm1167_vm0 = vcmp.ge.f32.partialorder %v2087_v22, %v1150_v53  ;;  %v2217_v17 = vcvt.s32.f32 %v1354_v45  ;;  %v1368_v58 = vshra.s32 %v2212_v52, 16 }
 0x357   : > { %v2221_v48 = vsel %vm1167_vm0, %v2110_v25, 128  ;;  %v1152_v20 = vpop.xlane.xlu1 %1151  ;;  %1315 = vmin.xlane.f32.xlu1 %v2214_v56 }
 0x358   : > { %vm1168_vm1 = vcmp.ge.f32.partialorder %v2091_v24, %v1152_v20  ;;  %1357 = vmin.xlane.f32.xlu0 %v2217_v17  ;;  %v2226_v61 = vcvt.s32.f32 %v1368_v58  ;;  %v1382_v5 = vshra.s32 %v2221_v48, 16 }
 0x359   : > { %v2230_v22 = vsel %vm1168_vm1, %v2110_v25, 128  ;;  %v2232_v6 = vpop.xlane.xlu0 %913 }
 0x35a   : > { %v945_v55 = vsub.f32 %v1972_v29, %v2232_v6  ;;  %v2236_v10 = vcvt.s32.f32 %v1382_v5  ;;  %v1396_v14 = vshra.s32 %v2230_v22, 16 }
 0x35b   : > { %v2239_v18 = vpop.xlane.xlu1 %915  ;;  %1371 = vmin.xlane.f32.xlu1 %v2226_v61 }
 0x35c   : > { %v961_v24 = vmul.f32 1.442695, %v945_v55  ;;  %v946_v0 = vsub.f32 %v1981_v34, %v2239_v18  ;;  %1385 = vmin.xlane.f32.xlu0 %v2236_v10  ;;  %v2245_v23 = vcvt.s32.f32 %v1396_v14 }
 0x35d   : > { %v2247_v36 = vpop.xlane.xlu0 %917 }
 0x35e   : > { %1740 = vpow2.f32 %v961_v24  ;;  %v963_v37 = vmul.f32 1.442695, %v946_v0  ;;  %v947_v7 = vsub.f32 %v1968_v26, %v2247_v36 }
 0x35f   : > { %v2251_v44 = vpop.xlane.xlu1 %919  ;;  %1399 = vmin.xlane.f32.xlu1 %v2245_v23 }
 0x360   : > { %1742 = vpow2.f32 %v963_v37  ;;  %v965_v45 = vmul.f32 1.442695, %v947_v7  ;;  %v948_v53 = vsub.f32 %v1975_v31, %v2251_v44 }
 0x361   : > { %v2256_v58 = vpop.xlane.xlu0 %921 }
 0x362   : > { %1744 = vpow2.f32 %v965_v45  ;;  %v967_v20 = vmul.f32 1.442695, %v948_v53  ;;  %v949_v5 = vsub.f32 %v2010_v49, %v2256_v58 }
 0x363   : > { %v2260_v55 = vpop.xlane.xlu1 %923 }
 0x364   : > { %1746 = vpow2.f32 %v967_v20  ;;  %v969_v14 = vmul.f32 1.442695, %v949_v5  ;;  %v950_v24 = vsub.f32 %v2013_v50, %v2260_v55 }
 0x365   : > { %v2264_v0 = vpop.xlane.xlu0 %925 }
 0x366   : > { %2565 = vst [vmem:[#allocation14_spill] sm:$0xff] %v2264_v0  ;;  %1748 = vpow2.f32 %v969_v14  ;;  %v971_v37 = vmul.f32 1.442695, %v950_v24  ;;  %v951_v7 = vsub.f32 %v1998_v42, %v2264_v0 }
 0x367   : > { %v2268_v31 = vpop.xlane.xlu1 %927 }
 0x368   : > { %v1741_v45 = vpop.eup %1740  ;;  %1750 = vpow2.f32 %v971_v37  ;;  %v973_v53 = vmul.f32 1.442695, %v951_v7  ;;  %v952_v49 = vsub.f32 %v2004_v46, %v2268_v31 }
 0x369   : > { %993 = vadd.xlane.f32.xlu0 %v1741_v45  ;;  %v2272_v20 = vpop.xlane.xlu0 %929 }
 0x36a   : > { %v1743_v5 = vpop.eup %1742  ;;  %1752 = vpow2.f32 %v973_v53  ;;  %v975_v50 = vmul.f32 1.442695, %v952_v49  ;;  %v953_v14 = vsub.f32 %v2042_v1, %v2272_v20 }
 0x36b   : > { %v2276_v24 = vpop.xlane.xlu1 %931  ;;  %995 = vadd.xlane.f32.xlu1 %v1743_v5 }
 0x36c   : > { %v1745_v42 = vpop.eup %1744  ;;  %1754 = vpow2.f32 %v975_v50  ;;  %v977_v0 = vmul.f32 1.442695, %v953_v14  ;;  %v954_v37 = vsub.f32 %v2045_v2, %v2276_v24 }
 0x36d   : > { %997 = vadd.xlane.f32.xlu0 %v1745_v42  ;;  %v2280_v7 = vpop.xlane.xlu0 %933 }
 0x36e   : > { %v1747_v45 = vpop.eup %1746  ;;  %1756 = vpow2.f32 %v977_v0  ;;  %v979_v46 = vmul.f32 1.442695, %v954_v37  ;;  %v955_v49 = vsub.f32 %v2027_v57, %v2280_v7 }
 0x36f   : > { %v2284_v53 = vpop.xlane.xlu1 %935  ;;  %999 = vadd.xlane.f32.xlu1 %v1747_v45 }
 0x370   : > { %2566 = vst [vmem:[#allocation15_spill] sm:$0xff] %v2284_v53  ;;  %v1749_v1 = vpop.eup %1748  ;;  %1758 = vpow2.f32 %v979_v46  ;;  %v981_v5 = vmul.f32 1.442695, %v955_v49  ;;  %v956_v50 = vsub.f32 %v2035_v62, %v2284_v53 }
 0x371   : > { %1001 = vadd.xlane.f32.xlu0 %v1749_v1  ;;  %v2288_v14 = vpop.xlane.xlu0 %937 }
 0x372   : > { %2567 = vst [vmem:[#allocation16_spill] sm:$0xff] %v2288_v14  ;;  %v1751_v42 = vpop.eup %1750  ;;  %1760 = vpow2.f32 %v981_v5  ;;  %v983_v2 = vmul.f32 1.442695, %v956_v50  ;;  %v957_v46 = vsub.f32 %v2062_v11, %v2288_v14 }
 0x373   : > { %v2290_v0 = vpop.xlane.xlu1 %939  ;;  %1003 = vadd.xlane.f32.xlu1 %v1751_v42 }
 0x374   : > { %v1753_v37 = vpop.eup %1752  ;;  %1762 = vpow2.f32 %v983_v2  ;;  %v958_v50 = vsub.f32 %v2071_v16, %v2290_v0  ;;  %v985_v62 = vmul.f32 1.442695, %v957_v46  ;;  %v1213_v46 = vand.u32 65535, %v2114_v30 }
 0x375   : > { %1005 = vadd.xlane.f32.xlu0 %v1753_v37  ;;  %v2292_v57 = vpop.xlane.xlu0 %941 }
 0x376   : > { %v1755_v45 = vpop.eup %1754  ;;  %v959_v1 = vsub.f32 %v2068_v15, %v2292_v57  ;;  %v987_v14 = vmul.f32 1.442695, %v958_v50  ;;  %v1227_v50 = vand.u32 65535, %v2126_v33 }
 0x377   : > { %v2298_v49 = vpop.xlane.xlu1 %943  ;;  %1007 = vadd.xlane.f32.xlu1 %v1755_v45 }
 0x378   : > { %v1757_v5 = vpop.eup %1756  ;;  %v989_v42 = vmul.f32 1.442695, %v959_v1  ;;  %v960_v2 = vsub.f32 %v2078_v19, %v2298_v49 }
 0x379   : > { %1009 = vadd.xlane.f32.xlu0 %v1757_v5 }
 0x37a   : > { %v1759_v37 = vpop.eup %1758  ;;  %1764 = vpow2.f32 %v989_v42  ;;  %v991_v53 = vmul.f32 1.442695, %v960_v2  ;;  %v1185_v42 = vand.u32 65535, %v2118_v32  ;;  %v1229_v2 = vcvt.s32.f32 %v1227_v50 }
 0x37b   : > { %1011 = vadd.xlane.f32.xlu1 %v1759_v37  ;;  %v1269_v32 = vand.u32 65535, %v2141_v54 }
 0x37c   : > { %v1761_v11 = vpop.eup %1760  ;;  %1766 = vpow2.f32 %v991_v53  ;;  %v1187_v30 = vcvt.s32.f32 %v1185_v42 }
 0x37d   : > { %1013 = vadd.xlane.f32.xlu0 %v1761_v11  ;;  %1768 = vpow2.f32 %v985_v62  ;;  %v1215_v11 = vcvt.s32.f32 %v1213_v46  ;;  %v1255_v46 = vand.u32 65535, %v2162_v4  ;;  %v1339_v4 = vand.u32 65535, %v2178_v13 }
 0x37e   : > { %v1763_v15 = vpop.eup %1762  ;;  %1770 = vpow2.f32 %v987_v14  ;;  %v1311_v13 = vand.u32 65535, %v2194_v28  ;;  %v1367_v28 = vand.u32 65535, %v2212_v52  ;;  %v1395_v52 = vand.u32 65535, %v2230_v22 }
 0x37f   : > { %1015 = vadd.xlane.f32.xlu1 %v1763_v15  ;;  %v1199_v15 = vand.u32 65535, %v2130_v35  ;;  %v1283_v35 = vand.u32 65535, %v2147_v40 }
 0x380   : > { %v1397_v22 = vcvt.s32.f32 %v1395_v52 }
 0x381   : > { %v1285_v42 = vcvt.s32.f32 %v1283_v35 }
 0x384   : > { %v1765_v45 = vpop.eup %1764 }
 0x385   : > { %1021 = vadd.xlane.f32.xlu0 %v1765_v45  ;;  %v1201_v45 = vcvt.s32.f32 %v1199_v15  ;;  %v1257_v15 = vcvt.s32.f32 %v1255_v46  ;;  %v1369_v46 = vcvt.s32.f32 %v1367_v28 }
 0x386   : > { %v1767_v1 = vpop.eup %1766 }
 0x387   : > { %1023 = vadd.xlane.f32.xlu1 %v1767_v1  ;;  %v1769_v16 = vpop.eup %1768  ;;  %v1241_v1 = vand.u32 65535, %v2157_v51  ;;  %v1325_v51 = vand.u32 65535, %v2173_v59  ;;  %v1297_v59 = vand.u32 65535, %v2189_v3  ;;  %v1353_v3 = vand.u32 65535, %v2205_v9 }
 0x388   : > { %v1771_v5 = vpop.eup %1770  ;;  %v1381_v9 = vand.u32 65535, %v2221_v48 }
 0x389   : > { %1017 = vadd.xlane.f32.xlu0 %v1769_v16 }
 0x38a   : > { %v1383_v48 = vcvt.s32.f32 %v1381_v9 }
 0x38b   : > { %1019 = vadd.xlane.f32.xlu1 %v1771_v5 }
 0x3cc   : > { %v2307_v53 = vpop.xlane.xlu0 %1217 }
 0x3cd   : > { %vm1219_vm2 = vcmp.eq.f32.partialorder %v2122_v41, %v2307_v53 }
 0x3ce   : > { %v1220_v62 = vsel %vm1219_vm2, %v1215_v11, inf  ;;  %vm1426_vm2 = vcmp.lt.s32.totalorder %v2110_v25, 8 }
 0x3cf   : > { %1221 = vmin.xlane.f32.xlu0 %v1220_v62 }
 0x3d0   : > { %v2312_v14 = vpop.xlane.xlu1 %1231  ;;  %v2314_v16 = vpop.xlane.xlu0 %1189 }
 0x3d1   : > { %vm1233_vm3 = vcmp.eq.f32.partialorder %v2134_v47, %v2312_v14  ;;  %vm1191_vm4 = vcmp.eq.f32.partialorder %v2136_v38, %v2314_v16  ;;  %v1271_v47 = vcvt.s32.f32 %v1269_v32 }
 0x3d2   : > { %v1234_v33 = vsel %vm1233_vm3, %v1229_v2, inf  ;;  %v1192_v41 = vsel %vm1191_vm4, %v1187_v30, inf  ;;  %vm1409_vm3 = vcmask 7168  }
 0x3d3   : > { %1235 = vmin.xlane.f32.xlu1 %v1234_v33  ;;  %1193 = vmin.xlane.f32.xlu0 %v1192_v41  ;;  %v1341_v33 = vcvt.s32.f32 %v1339_v4 }
 0x3d4   : > { %v2322_v37 = vpop.xlane.xlu1 %1203 }
 0x3d5   : > { %v2325_v5 = vpop.xlane.xlu0 %1273  ;;  %vm1205_vm5 = vcmp.eq.f32.partialorder %v2150_v60, %v2322_v37  ;;  %v1243_v60 = vcvt.s32.f32 %v1241_v1  ;;  %v1313_v1 = vcvt.s32.f32 %v1311_v13 }
 0x3d6   : > { %v1206_v54 = vsel %vm1205_vm5, %v1201_v45, inf  ;;  %vm1275_vm6 = vcmp.eq.f32.partialorder %v2154_v63, %v2325_v5 }
 0x3d7   : > { %1207 = vmin.xlane.f32.xlu1 %v1206_v54  ;;  %v1276_v38 = vsel %vm1275_vm6, %v1271_v47, inf }
 0x3d8   : > { %v2332_v40 = vpop.xlane.xlu1 %1287  ;;  %1277 = vmin.xlane.f32.xlu0 %v1276_v38 }
 0x3d9   : > { %v2335_v50 = vpop.xlane.xlu0 %1245  ;;  %vm1289_vm7 = vcmp.eq.f32.partialorder %v2166_v8, %v2332_v40  ;;  %v1327_v8 = vcvt.s32.f32 %v1325_v51 }
 0x3da   : > { %v1290_v11 = vsel %vm1289_vm7, %v1285_v42, inf  ;;  %vm1247_vm8 = vcmp.eq.f32.partialorder %v2170_v12, %v2335_v50 }
 0x3db   : > { %1291 = vmin.xlane.f32.xlu1 %v1290_v11  ;;  %v1248_v63 = vsel %vm1247_vm8, %v1243_v60, inf }
 0x3dc   : > { %v2342_v62 = vpop.xlane.xlu1 %1259  ;;  %1249 = vmin.xlane.f32.xlu0 %v1248_v63 }
 0x3dd   : > { %v2345_v2 = vpop.xlane.xlu0 %1329  ;;  %vm1261_vm9 = vcmp.eq.f32.partialorder %v2182_v21, %v2342_v62  ;;  %v1299_v21 = vcvt.s32.f32 %v1297_v59 }
 0x3de   : > { %v1262_v30 = vsel %vm1261_vm9, %v1257_v15, inf  ;;  %vm1331_vm10 = vcmp.eq.f32.partialorder %v2186_v27, %v2345_v2 }
 0x3df   : > { %1263 = vmin.xlane.f32.xlu1 %v1262_v30  ;;  %v1332_v12 = vsel %vm1331_vm10, %v1327_v8, inf }
 0x3e0   : > { %v2352_v32 = vpop.xlane.xlu1 %1343  ;;  %1333 = vmin.xlane.f32.xlu0 %v1332_v12 }
 0x3e1   : > { %v2355_v41 = vpop.xlane.xlu0 %1301  ;;  %vm1345_vm11 = vcmp.eq.f32.partialorder %v2198_v39, %v2352_v32  ;;  %v1355_v39 = vcvt.s32.f32 %v1353_v3 }
 0x3e2   : > { %v1346_v35 = vsel %vm1345_vm11, %v1341_v33, inf  ;;  %vm1303_vm12 = vcmp.eq.f32.partialorder %v2202_v43, %v2355_v41 }
 0x3e3   : > { %1347 = vmin.xlane.f32.xlu1 %v1346_v35  ;;  %v1304_v27 = vsel %vm1303_vm12, %v1299_v21, inf }
 0x3e4   : > { %v2362_v45 = vpop.xlane.xlu1 %1315  ;;  %1305 = vmin.xlane.f32.xlu0 %v1304_v27 }
 0x3e5   : > { %v2365_v47 = vpop.xlane.xlu0 %1357  ;;  %vm1317_vm13 = vcmp.eq.f32.partialorder %v2214_v56, %v2362_v45 }
 0x3e6   : > { %v1318_v54 = vsel %vm1317_vm13, %v1313_v1, inf  ;;  %vm1359_vm14 = vcmp.eq.f32.partialorder %v2217_v17, %v2365_v47 }
 0x3e7   : > { %1319 = vmin.xlane.f32.xlu1 %v1318_v54  ;;  %v1360_v43 = vsel %vm1359_vm14, %v1355_v39, inf }
 0x3e8   : > { %v2372_v38 = vpop.xlane.xlu1 %1371  ;;  %1361 = vmin.xlane.f32.xlu0 %v1360_v43 }
 0x3e9   : > { %v2374_v42 = vpop.xlane.xlu0 %1385  ;;  %vm1373_vm15 = vcmp.eq.f32.partialorder %v2226_v61, %v2372_v38 }
 0x3ea   : > { %v1374_v56 = vsel %vm1373_vm15, %v1369_v46, inf  ;;  %vm1387_vm0 = vcmp.eq.f32.partialorder %v2236_v10, %v2374_v42 }
 0x3eb   : > { %1375 = vmin.xlane.f32.xlu1 %v1374_v56  ;;  %v1388_v17 = vsel %vm1387_vm0, %v1383_v48, inf }
 0x3ec   : > { %v2380_v51 = vpop.xlane.xlu1 %1399  ;;  %1389 = vmin.xlane.f32.xlu0 %v1388_v17 }
 0x3ed   : > { %vm1401_vm1 = vcmp.eq.f32.partialorder %v2245_v23, %v2380_v51 }
 0x3ee   : > { %v1402_v60 = vsel %vm1401_vm1, %v1397_v22, inf }
 0x3ef   : > { %1403 = vmin.xlane.f32.xlu1 %v1402_v60 }
 0x3f6   : > { %v994_v11 = vpop.xlane.xlu0 %993 }
 0x3f7   : > { %1772 = vlog2.f32 %v994_v11 }
 0x3f8   : > { %v996_v63 = vpop.xlane.xlu1 %995 }
 0x3f9   : > { %1774 = vlog2.f32 %v996_v63 }
 0x3fa   : > { %v998_v61 = vpop.xlane.xlu0 %997 }
 0x3fb   : > { %1776 = vlog2.f32 %v998_v61 }
 0x3fc   : > { %v1000_v4 = vpop.xlane.xlu1 %999 }
 0x3fd   : > { %1778 = vlog2.f32 %v1000_v4 }
 0x3fe   : > { %v1002_v10 = vpop.xlane.xlu0 %1001 }
 0x3ff   : > { %1780 = vlog2.f32 %v1002_v10 }
 0x400   : > { %v1004_v15 = vpop.xlane.xlu1 %1003 }
 0x401   : > { %v1773_v59 = vpop.eup %1772  ;;  %1782 = vlog2.f32 %v1004_v15 }
 0x402   : > { %v1026_v8 = vmul.f32 0.6931472, %v1773_v59  ;;  %v1006_v30 = vpop.xlane.xlu0 %1005 }
 0x403   : > { %v1775_v12 = vpop.eup %1774  ;;  %1784 = vlog2.f32 %v1006_v30 }
 0x404   : > { %v1057_v23 = vadd.f32 %v1026_v8, %v2232_v6  ;;  %v1028_v13 = vmul.f32 0.6931472, %v1775_v12  ;;  %v1008_v33 = vpop.xlane.xlu1 %1007  ;;  %v2570_v8 = vld [vmem:[#allocation6_spill] sm:$0xff] }
 0x405   : > { %v1777_v3 = vpop.eup %1776  ;;  %1786 = vlog2.f32 %v1008_v33  ;;  %v2571_v12 = vld [vmem:[#allocation14_spill] sm:$0xff] }
 0x406   : > { %v1073_v21 = vsub.f32 %v1972_v29, %v1057_v23  ;;  %v1058_v35 = vadd.f32 %v1028_v13, %v2239_v18  ;;  %v1030_v27 = vmul.f32 0.6931472, %v1777_v3  ;;  %v1010_v28 = vpop.xlane.xlu0 %1009 }
 0x407   : > { %v1779_v1 = vpop.eup %1778  ;;  %1788 = vlog2.f32 %v1010_v28 }
 0x408   : > { %v1427_v6 = vsel %vm1426_vm2, %v1073_v21, 0.0  ;;  %v1074_v9 = vsub.f32 %v1981_v34, %v1058_v35  ;;  %v1059_v39 = vadd.f32 %v1030_v27, %v2247_v36  ;;  %v1032_v54 = vmul.f32 0.6931472, %v1779_v1  ;;  %v1012_v43 = vpop.xlane.xlu1 %1011  ;;  %v2568_v36 = vld [vmem:[#allocation2_spill] sm:$0xff]  ;;  %v2572_v21 = vld [vmem:[#allocation3_spill] sm:$0xff] }
 0x409   : > { %v1781_v52 = vpop.eup %1780  ;;  %1443 = vst [vmem:[%s2390_s14] sm:$0xff] %v1427_v6  ;;  %1790 = vlog2.f32 %v1012_v43 }
 0x40a   : > { %v1428_v29 = vsel %vm1426_vm2, %v1074_v9, 0.0  ;;  %v1075_v18 = vsub.f32 %v1968_v26, %v1059_v39  ;;  %v1060_v46 = vadd.f32 %v1032_v54, %v2251_v44  ;;  %v1034_v48 = vmul.f32 0.6931472, %v1781_v52  ;;  %v1014_v56 = vpop.xlane.xlu0 %1013  ;;  %v2569_v44 = vld [vmem:[#allocation5_spill] sm:$0xff]  ;;  %v2573_v9 = vld [vmem:[#allocation4_spill] sm:$0xff] }
 0x40b   : > { %v1783_v17 = vpop.eup %1782  ;;  %1444 = vst [vmem:[%s2390_s14 + $0x8] sm:$0xff] %v1428_v29  ;;  %1792 = vlog2.f32 %v1014_v56 }
 0x40c   : > { %v1429_v34 = vsel %vm1426_vm2, %v1075_v18, 0.0  ;;  %v1076_v22 = vsub.f32 %v2568_v36, %v1060_v46  ;;  %v1061_v60 = vadd.f32 %v1034_v48, %v2256_v58  ;;  %v1036_v11 = vmul.f32 0.6931472, %v1783_v17  ;;  %v1016_v63 = vpop.xlane.xlu1 %1015  ;;  %v2574_v18 = vld [vmem:[#allocation9_spill] sm:$0xff]  ;;  %v2575_v36 = vld [vmem:[#allocation10_spill] sm:$0xff] }
 0x40d   : > { %v1785_v61 = vpop.eup %1784  ;;  %1445 = vst [vmem:[%s2390_s14 + $0x10] sm:$0xff] %v1429_v34  ;;  %1794 = vlog2.f32 %v1016_v63 }
 0x40e   : > { %v1430_v26 = vsel %vm1426_vm2, %v1076_v22, 0.0  ;;  %v1077_v4 = vsub.f32 %v2569_v44, %v1061_v60  ;;  %v1062_v10 = vadd.f32 %v1036_v11, %v2260_v55  ;;  %v1038_v15 = vmul.f32 0.6931472, %v1785_v61  ;;  %v2576_v61 = vld [vmem:[#allocation7_spill] sm:$0xff] }
 0x40f   : > { %v1787_v59 = vpop.eup %1786  ;;  %1446 = vst [vmem:[%s2390_s14 + $0x18] sm:$0xff] %v1430_v26  ;;  %v2577_v44 = vld [vmem:[#allocation15_spill] sm:$0xff] }
 0x410   : > { %v1431_v58 = vsel %vm1426_vm2, %v1077_v4, 0.0  ;;  %v1078_v30 = vsub.f32 %v2570_v8, %v1062_v10  ;;  %v1063_v23 = vadd.f32 %v1038_v15, %v2571_v12  ;;  %v1040_v13 = vmul.f32 0.6931472, %v1787_v59  ;;  %v2578_v15 = vld [vmem:[#allocation8_spill] sm:$0xff] }
 0x411   : > { %v1789_v33 = vpop.eup %1788  ;;  %1447 = vst [vmem:[%s2390_s14 + $0x20] sm:$0xff] %v1431_v58 }
 0x412   : > { %v1432_v3 = vsel %vm1426_vm2, %v1078_v30, 0.0  ;;  %v1079_v55 = vsub.f32 %v2572_v21, %v1063_v23  ;;  %v1064_v35 = vadd.f32 %v1040_v13, %v2268_v31  ;;  %v1042_v27 = vmul.f32 0.6931472, %v1789_v33  ;;  %v1022_v28 = vpop.xlane.xlu0 %1021  ;;  %v2579_v33 = vld [vmem:[#allocation12_spill] sm:$0xff] }
 0x413   : > { %v1791_v1 = vpop.eup %1790  ;;  %1448 = vst [vmem:[%s2390_s14 + $0x28] sm:$0xff] %v1432_v3  ;;  %1796 = vlog2.f32 %v1022_v28 }
 0x414   : > { %v1433_v6 = vsel %vm1426_vm2, %v1079_v55, 0.0  ;;  %v1080_v39 = vsub.f32 %v2573_v9, %v1064_v35  ;;  %v1065_v54 = vadd.f32 %v1042_v27, %v2272_v20  ;;  %v1044_v43 = vmul.f32 0.6931472, %v1791_v1  ;;  %v1024_v52 = vpop.xlane.xlu1 %1023  ;;  %v2580_v1 = vld [vmem:[#allocation16_spill] sm:$0xff] }
 0x415   : > { %v1793_v29 = vpop.eup %1792  ;;  %1449 = vst [vmem:[%s2390_s14 + $0x30] sm:$0xff] %v1433_v6  ;;  %1798 = vlog2.f32 %v1024_v52  ;;  %v2582_v52 = vld [vmem:[#allocation13_spill] sm:$0xff] }
 0x416   : > { %v1434_v31 = vsel %vm1426_vm2, %v1080_v39, 0.0  ;;  %v1081_v46 = vsub.f32 %v2574_v18, %v1065_v54  ;;  %v1066_v48 = vadd.f32 %v1044_v43, %v2276_v24  ;;  %v1046_v56 = vmul.f32 0.6931472, %v1793_v29  ;;  %v1018_v17 = vpop.xlane.xlu0 %1017  ;;  %v2581_v39 = vld [vmem:[#allocation11_spill] sm:$0xff] }
 0x417   : > { %v1795_v34 = vpop.eup %1794  ;;  %1450 = vst [vmem:[%s2390_s14 + $0x38] sm:$0xff] %v1434_v31  ;;  %1800 = vlog2.f32 %v1018_v17  ;;  %v1224_v31 = vcvt.f32.s32 %v2307_v53  ;;  %v1238_v18 = vcvt.f32.s32 %v2312_v14  ;;  %v1210_v14 = vcvt.f32.s32 %v2322_v37 }
 0x418   : > { %v1435_v20 = vsel %vm1426_vm2, %v1081_v46, 0.0  ;;  %v1082_v22 = vsub.f32 %v2575_v36, %v1066_v48  ;;  %v1067_v60 = vadd.f32 %v1046_v56, %v2280_v7  ;;  %v1048_v11 = vmul.f32 0.6931472, %v1795_v34  ;;  %v1020_v63 = vpop.xlane.xlu1 %1019 }
 0x419   : > { %1451 = vst [vmem:[%s2390_s14 + $0x40] sm:$0xff] %v1435_v20  ;;  %1802 = vlog2.f32 %v1020_v63  ;;  %v1225_v48 = vshll.u32 %v1224_v31, 16  ;;  %v1196_v56 = vcvt.f32.s32 %v2314_v16  ;;  %v1239_v17 = vshll.u32 %v1238_v18, 16 }
 0x41a   : > { %v1436_v24 = vsel %vm1426_vm2, %v1082_v22, 0.0  ;;  %v1083_v26 = vsub.f32 %v2576_v61, %v1067_v60  ;;  %v1068_v4 = vadd.f32 %v1048_v11, %v2577_v44  ;;  %v1280_v22 = vcvt.f32.s32 %v2325_v5 }
 0x41b   : > { %1452 = vst [vmem:[%s2390_s14 + $0x48] sm:$0xff] %v1436_v24  ;;  %v1197_v20 = vshll.u32 %v1196_v56, 16  ;;  %v1211_v24 = vshll.u32 %v1210_v14, 16  ;;  %v1294_v61 = vcvt.f32.s32 %v2332_v40  ;;  %v1378_v31 = vcvt.f32.s32 %v2372_v38 }
 0x41c   : > { %v1437_v10 = vsel %vm1426_vm2, %v1083_v26, 0.0  ;;  %v1084_v59 = vsub.f32 %v2578_v15, %v1068_v4  ;;  %v1281_v44 = vshll.u32 %v1280_v22, 16  ;;  %v1252_v4 = vcvt.f32.s32 %v2335_v50 }
 0x41d   : > { %v1797_v58 = vpop.eup %1796  ;;  %1453 = vst [vmem:[%s2390_s14 + $0x50] sm:$0xff] %v1437_v10  ;;  %v1406_v38 = vcvt.f32.s32 %v2380_v51 }
 0x41e   : > { %v1438_v7 = vsel %vm1426_vm2, %v1084_v59, 0.0  ;;  %v1054_v8 = vmul.f32 0.6931472, %v1797_v58  ;;  %v1295_v58 = vshll.u32 %v1294_v61, 16 }
 0x41f   : > { %v1799_v30 = vpop.eup %1798  ;;  %1454 = vst [vmem:[%s2390_s14 + $0x58] sm:$0xff] %v1438_v7  ;;  %v1266_v7 = vcvt.f32.s32 %v2342_v62  ;;  %v1407_v22 = vshll.u32 %v1406_v38, 16 }
 0x420   : > { %v1071_v12 = vadd.f32 %v1054_v8, %v2292_v57  ;;  %v1056_v23 = vmul.f32 0.6931472, %v1799_v30  ;;  %v1253_v30 = vshll.u32 %v1252_v4, 16 }
 0x421   : > { %v1801_v13 = vpop.eup %1800 }
 0x422   : > { %v1087_v3 = vsub.f32 %v2579_v33, %v1071_v12  ;;  %v1072_v21 = vadd.f32 %v1056_v23, %v2298_v49  ;;  %v1050_v55 = vmul.f32 0.6931472, %v1801_v13  ;;  %v1336_v12 = vcvt.f32.s32 %v2345_v2 }
 0x423   : > { %v1803_v35 = vpop.eup %1802 }
 0x424   : > { %v1441_v27 = vsel %vm1426_vm2, %v1087_v3, 0.0  ;;  %v1088_v28 = vsub.f32 %v2078_v19, %v1072_v21  ;;  %v1069_v6 = vadd.f32 %v1050_v55, %v2580_v1  ;;  %v1052_v9 = vmul.f32 0.6931472, %v1803_v35 }
 0x425   : > { %1457 = vst [vmem:[%s2390_s14 + $0x70] sm:$0xff] %v1441_v27  ;;  %v1267_v3 = vshll.u32 %v1266_v7, 16  ;;  %v1350_v21 = vcvt.f32.s32 %v2352_v32  ;;  %v1337_v35 = vshll.u32 %v1336_v12, 16  ;;  %v1308_v27 = vcvt.f32.s32 %v2355_v41 }
 0x426   : > { %v1442_v57 = vsel %vm1426_vm2, %v1088_v28, 0.0  ;;  %v1085_v54 = vsub.f32 %v2581_v39, %v1069_v6  ;;  %v1070_v49 = vadd.f32 %v1052_v9, %v2290_v0 }
 0x427   : > { %1458 = vst [vmem:[%s2390_s14 + $0x78] sm:$0xff] %v1442_v57  ;;  %v1351_v9 = vshll.u32 %v1350_v21, 16  ;;  %v1322_v57 = vcvt.f32.s32 %v2362_v45 }
 0x428   : > { %v1439_v43 = vsel %vm1426_vm2, %v1085_v54, 0.0  ;;  %v1086_v29 = vsub.f32 %v2582_v52, %v1070_v49  ;;  %v1309_v54 = vshll.u32 %v1308_v27, 16  ;;  %v1364_v49 = vcvt.f32.s32 %v2365_v47 }
 0x429   : > { %1455 = vst [vmem:[%s2390_s14 + $0x60] sm:$0xff] %v1439_v43 }
 0x42a   : > { %v1440_v19 = vsel %vm1426_vm2, %v1086_v29, 0.0 }
 0x42b   : > { %1456 = vst [vmem:[%s2390_s14 + $0x68] sm:$0xff] %v1440_v19  ;;  %v1323_v19 = vshll.u32 %v1322_v57, 16 }
 0x45c   : > { %v1222_v46 = vpop.xlane.xlu0 %1221 }
 0x45d   : > { %v1223_v0 = vcvt.f32.s32 %v1222_v46  ;;  %v1365_v46 = vshll.u32 %v1364_v49, 16 }
 0x45f   : > { %v1226_v25 = vadd.s32 %v1225_v48, %v1223_v0  ;;  %v1392_v48 = vcvt.f32.s32 %v2374_v42 }
 0x460   : > { %v1236_v34 = vpop.xlane.xlu1 %1235  ;;  %v1194_v53 = vpop.xlane.xlu0 %1193 }
 0x461   : > { %1412 = vst.msk [vmem:[%s2478_s17 + $0x10] sm:$0xff] %vm1409_vm3, %v1226_v25  ;;  %v1237_v16 = vcvt.f32.s32 %v1236_v34  ;;  %v1195_v36 = vcvt.f32.s32 %v1194_v53 }
 0x463   : > { %v1240_v60 = vadd.s32 %v1239_v17, %v1237_v16  ;;  %v1198_v11 = vadd.s32 %v1197_v20, %v1195_v36  ;;  %v1379_v17 = vshll.u32 %v1378_v31, 16  ;;  %v1393_v20 = vshll.u32 %v1392_v48, 16 }
 0x464   : > { %v1208_v63 = vpop.xlane.xlu1 %1207 }
 0x465   : > { %1413 = vst.msk [vmem:[%s2478_s17 + $0x18] sm:$0xff] %vm1409_vm3, %v1240_v60  ;;  %1410 = vst.msk [vmem:[%s2478_s17] sm:$0xff] %vm1409_vm3, %v1198_v11  ;;  %v1209_v26 = vcvt.f32.s32 %v1208_v63  ;;  %v1278_v37 = vpop.xlane.xlu0 %1277 }
 0x466   : > { %v1279_v10 = vcvt.f32.s32 %v1278_v37 }
 0x467   : > { %v1212_v15 = vadd.s32 %v1211_v24, %v1209_v26 }
 0x468   : > { %v1282_v5 = vadd.s32 %v1281_v44, %v1279_v10  ;;  %v1292_v59 = vpop.xlane.xlu1 %1291 }
 0x469   : > { %1411 = vst.msk [vmem:[%s2478_s17 + $0x8] sm:$0xff] %vm1409_vm3, %v1212_v15  ;;  %v1293_v40 = vcvt.f32.s32 %v1292_v59  ;;  %v1250_v8 = vpop.xlane.xlu0 %1249 }
 0x46a   : > { %1416 = vst.msk [vmem:[%s2478_s17 + $0x30] sm:$0xff] %vm1409_vm3, %v1282_v5  ;;  %v1251_v23 = vcvt.f32.s32 %v1250_v8 }
 0x46b   : > { %v1296_v50 = vadd.s32 %v1295_v58, %v1293_v40 }
 0x46c   : > { %v1254_v13 = vadd.s32 %v1253_v30, %v1251_v23  ;;  %v1264_v33 = vpop.xlane.xlu1 %1263 }
 0x46d   : > { %1417 = vst.msk [vmem:[%s2478_s17 + $0x38] sm:$0xff] %vm1409_vm3, %v1296_v50  ;;  %v1265_v62 = vcvt.f32.s32 %v1264_v33  ;;  %v1334_v55 = vpop.xlane.xlu0 %1333 }
 0x46e   : > { %1414 = vst.msk [vmem:[%s2478_s17 + $0x20] sm:$0xff] %vm1409_vm3, %v1254_v13  ;;  %v1335_v2 = vcvt.f32.s32 %v1334_v55 }
 0x46f   : > { %v1268_v28 = vadd.s32 %v1267_v3, %v1265_v62 }
 0x470   : > { %v1338_v1 = vadd.s32 %v1337_v35, %v1335_v2  ;;  %v1348_v6 = vpop.xlane.xlu1 %1347 }
 0x471   : > { %1415 = vst.msk [vmem:[%s2478_s17 + $0x28] sm:$0xff] %vm1409_vm3, %v1268_v28  ;;  %v1349_v32 = vcvt.f32.s32 %v1348_v6  ;;  %v1306_v39 = vpop.xlane.xlu0 %1305 }
 0x472   : > { %1420 = vst.msk [vmem:[%s2478_s17 + $0x50] sm:$0xff] %vm1409_vm3, %v1338_v1  ;;  %v1307_v41 = vcvt.f32.s32 %v1306_v39 }
 0x473   : > { %v1352_v43 = vadd.s32 %v1351_v9, %v1349_v32 }
 0x474   : > { %v1310_v52 = vadd.s32 %v1309_v54, %v1307_v41  ;;  %v1320_v29 = vpop.xlane.xlu1 %1319 }
 0x475   : > { %1421 = vst.msk [vmem:[%s2478_s17 + $0x58] sm:$0xff] %vm1409_vm3, %v1352_v43  ;;  %v1321_v45 = vcvt.f32.s32 %v1320_v29  ;;  %v1362_v18 = vpop.xlane.xlu0 %1361 }
 0x476   : > { %1418 = vst.msk [vmem:[%s2478_s17 + $0x40] sm:$0xff] %vm1409_vm3, %v1310_v52  ;;  %v1363_v47 = vcvt.f32.s32 %v1362_v18 }
 0x477   : > { %v1324_v56 = vadd.s32 %v1323_v19, %v1321_v45 }
 0x478   : > { %v1366_v0 = vadd.s32 %v1365_v46, %v1363_v47  ;;  %v1376_v25 = vpop.xlane.xlu1 %1375 }
 0x479   : > { %1419 = vst.msk [vmem:[%s2478_s17 + $0x48] sm:$0xff] %vm1409_vm3, %v1324_v56  ;;  %v1377_v34 = vcvt.f32.s32 %v1376_v25  ;;  %v1390_v53 = vpop.xlane.xlu0 %1389 }
 0x47a   : > { %1422 = vst.msk [vmem:[%s2478_s17 + $0x60] sm:$0xff] %vm1409_vm3, %v1366_v0  ;;  %v1391_v42 = vcvt.f32.s32 %v1390_v53 }
 0x47b   : > { %v1380_v14 = vadd.s32 %v1379_v17, %v1377_v34 }
 0x47c   : > { %v1394_v16 = vadd.s32 %v1393_v20, %v1391_v42  ;;  %v1404_v36 = vpop.xlane.xlu1 %1403 }
 0x47d   : > { %1423 = vst.msk [vmem:[%s2478_s17 + $0x68] sm:$0xff] %vm1409_vm3, %v1380_v14  ;;  %v1405_v60 = vcvt.f32.s32 %v1404_v36 }
 0x47e   : > { %1424 = vst.msk [vmem:[%s2478_s17 + $0x70] sm:$0xff] %vm1409_vm3, %v1394_v16 }
 0x47f   : > { %v1408_v11 = vadd.s32 %v1407_v22, %v1405_v60 }
 0x481   : > { %1425 = vst.msk [vmem:[%s2478_s17 + $0x78] sm:$0xff] %vm1409_vm3, %v1408_v11 }
 0x482 PF: > { %s20_s30 = sadd.s32 1, %s1810_s30  }
 0x483   : > { %p17_p4 = scmp.ge.s32.totalorder %s20_s30, 4  }
 0x485   :  { %19 = sbr.rel (!%p17_p4) target bundleno = 1 (0x1), region = 97 }

</bundles_post_ra>
